<compile_context>
chip_gen: v7x
topology: tpu7x:2x2x1
jax: 0.10.0
libtpu: 0.0.40
codegen_flags: <defaults>
</compile_context>

<pallas_src>
import functools

import jax
import jax.numpy as jnp
import numpy as np
from jax.experimental import pallas as pl
from jax.experimental.pallas import tpu as pltpu


# ----------------------------------------------------------------------------
# Pallas kernel: T decoder steps (grid axis 0 = time), weights resident.
# ----------------------------------------------------------------------------
def _make_kernel(E, H, C, has_mask):
    R0 = E + H + C          # row offset of the bias rows inside the gru slab
    H3 = 3 * H

    def kernel(*refs):
        if has_mask:
            (emb_ref, h0_ref, ctx_ref, ctxp_ref, mask_ref,
             gru_ref, h1w_ref, h2o_ref, outw_ref,
             logp_ref, hid_ref, h_sc) = refs
        else:
            (emb_ref, h0_ref, ctx_ref, ctxp_ref,
             gru_ref, h1w_ref, h2o_ref, outw_ref,
             logp_ref, hid_ref, h_sc) = refs
            mask_ref = None

        f32 = jnp.float32
        t = pl.program_id(0)

        # Initialize the recurrent state from last_hidden on the first step.
        @pl.when(t == 0)
        def _():
            h_sc[...] = h0_ref[...]

        x = emb_ref[...]            # (B, E) embedded previous word for step t
        h_prev = h_sc[...]          # (B, H)

        # ---- GRUCell 1 (gates fused along 3H, order r|z|n) -------------------
        gx1 = jnp.dot(x, gru_ref[0:E, :], preferred_element_type=f32) \
            + gru_ref[R0:R0 + 1, :]
        gh1 = jnp.dot(h_prev, gru_ref[E:E + H, :], preferred_element_type=f32) \
            + gru_ref[R0 + 1:R0 + 2, :]
        r1 = jax.nn.sigmoid(gx1[:, 0:H] + gh1[:, 0:H])
        z1 = jax.nn.sigmoid(gx1[:, H:2 * H] + gh1[:, H:2 * H])
        n1 = jnp.tanh(gx1[:, 2 * H:H3] + r1 * gh1[:, 2 * H:H3])
        h1 = (1.0 - z1) * n1 + z1 * h_prev

        # ---- fused h1 matmul: [hid2ctx | Whh2] in one (H, C+3H) slab ---------
        th = jnp.dot(h1, h1w_ref[0:H, :], preferred_element_type=f32)  # (B, C+3H)
        hid_p = th[:, 0:C]                                             # hid2ctx(h1)
        gh2 = th[:, C:C + H3] + gru_ref[R0 + 3:R0 + 4, :]              # Whh2 h1 + bhh2

        # ---- MLP (Bahdanau) attention; ctx2ctx applied once outside ----------
        act = jnp.tanh(ctxp_ref[...] + hid_p[:, None, :])              # (B, S, C)
        mlp_w = h1w_ref[H:H + 1, 0:C]                                  # (1, C)
        scores = jnp.sum(act * mlp_w[None, :, :], axis=-1)             # (B, S)

        e = jnp.exp(scores - jnp.max(scores, axis=-1, keepdims=True))
        if has_mask:
            e = e * mask_ref[...]
        # NOTE: pl.reciprocal(approx=True) would move this divide to the EUP;
        # kept exact so the f32 reference tolerance holds.
        alpha = e / jnp.sum(e, axis=-1, keepdims=True)                 # (B, S)
        wctx = jnp.sum(alpha[:, :, None] * ctx_ref[...], axis=1)       # (B, C)

        # ---- GRUCell 2 (ctx2hid folded into Wih2_fused) -----------------------
        gx2 = jnp.dot(wctx, gru_ref[E + H:E + H + C, :],
                      preferred_element_type=f32) + gru_ref[R0 + 2:R0 + 3, :]
        r2 = jax.nn.sigmoid(gx2[:, 0:H] + gh2[:, 0:H])
        z2 = jax.nn.sigmoid(gx2[:, H:2 * H] + gh2[:, H:2 * H])
        n2 = jnp.tanh(gx2[:, 2 * H:H3] + r2 * gh2[:, 2 * H:H3])
        h2 = (1.0 - z2) * n2 + z2 * h1

        h_sc[...] = h2               # carry to the next grid step
        hid_ref[...] = h2            # per-step gru_2_hidden output

        # ---- hid2out (tanh FF) + out FF + log_softmax -------------------------
        logit = jnp.tanh(jnp.dot(h2, h2o_ref[0:H, :], preferred_element_type=f32)
                         + h2o_ref[H:H + 1, :])                        # (B, E)
        o = (jnp.dot(logit, outw_ref[0:E, :], preferred_element_type=f32)
             + outw_ref[E:E + 1, :])                                   # (B, V)
        m = jnp.max(o, axis=-1, keepdims=True)
        lse = jnp.log(jnp.sum(jnp.exp(o - m), axis=-1, keepdims=True)) + m
        logp_ref[...] = o - lse

    return kernel


def decoder_steps_pallas(packed, word_emb_tbe, h0, ctx_bsc, ctx_p, mask_bs):
    """word_emb_tbe: (T, Bp, E); h0: (Bp, H); ctx_*: (Bp, S, C); mask: (Bp, S)|None."""
    T, Bp, E = word_emb_tbe.shape
    H = h0.shape[1]
    S, C = ctx_bsc.shape[1], ctx_bsc.shape[2]
    V = packed["out"].shape[1]
    has_mask = mask_bs is not None

    kernel = _make_kernel(E=E, H=H, C=C, has_mask=has_mask)

    def resident(shape):
        nd = len(shape)
        return pl.BlockSpec(shape, lambda t, _nd=nd: (0,) * _nd)

    def per_step(tail):
        nd = len(tail)
        return pl.BlockSpec((None,) + tail, lambda t, _nd=nd: (t,) + (0,) * _nd)

    inputs = [word_emb_tbe, h0, ctx_bsc, ctx_p]
    in_specs = [per_step((Bp, E)), resident((Bp, H)),
                resident((Bp, S, C)), resident((Bp, S, C))]
    if has_mask:
        inputs.append(mask_bs)
        in_specs.append(resident((Bp, S)))
    for name in ("gru", "h1w", "h2o", "out"):
        inputs.append(packed[name])
        in_specs.append(resident(packed[name].shape))

    return pl.pallas_call(
        kernel,
        grid=(T,),
        out_shape=(
            jax.ShapeDtypeStruct((T, Bp, V), jnp.float32),   # log-softmax per step
            jax.ShapeDtypeStruct((T, Bp, H), jnp.float32),   # gru_2_hidden per step
        ),
        in_specs=in_specs,
        out_specs=(per_step((Bp, V)), per_step((Bp, H))),
        scratch_shapes=[pltpu.VMEM((Bp, H), jnp.float32)],   # recurrent hidden state
        compiler_params=pltpu.CompilerParams(
            dimension_semantics=("arbitrary",)),             # time carries state
    )(*inputs)


# ----------------------------------------------------------------------------
# Plain-JAX glue: embedding gather, once-per-sentence encoder precompute,
# batch padding to full sublanes.
# ----------------------------------------------------------------------------
def precompute_encoder_state(packed, encoder_outputs, ctx_mask=None):
    """encoder_outputs: (S, B, C) as in the PyTorch module (done once per sentence)."""
    ctx_bsc = jnp.transpose(encoder_outputs, (1, 0, 2))        # (B, S, C) batch-major
    ctx_p = jnp.matmul(ctx_bsc, packed["ctx2ctx"])             # hoisted ctx2ctx
    mask_bs = None if ctx_mask is None else \
        jnp.transpose(ctx_mask, (1, 0)).astype(jnp.float32)    # (B, S)
    return ctx_bsc, ctx_p, mask_bs


def liumcvc_decoder_steps(packed, word_inputs, last_hidden, encoder_outputs,
                          ctx_mask=None):
    """Run T teacher-forced decoder steps in one pallas_call.

    word_inputs: (T, B) int32 previous-word ids per step.
    Returns (log_probs (T, B, V), gru_2_hidden (T, B, H))."""
    T, B = word_inputs.shape
    word_emb = jnp.take(packed["emb_table"], word_inputs.reshape(-1),
                        axis=0).reshape(T, B, -1)
    ctx_bsc, ctx_p, mask_bs = precompute_encoder_state(packed, encoder_outputs,
                                                       ctx_mask)
    # Pad batch to a multiple of 8 so every vreg sublane / MXU row is used.
    Bp = max(8, ((B + 7) // 8) * 8)
    pad = Bp - B
    if pad:
        word_emb = jnp.pad(word_emb, ((0, 0), (0, pad), (0, 0)))
        last_hidden_p = jnp.pad(last_hidden, ((0, pad), (0, 0)))
        ctx_bsc = jnp.pad(ctx_bsc, ((0, pad), (0, 0), (0, 0)))
        ctx_p = jnp.pad(ctx_p, ((0, pad), (0, 0), (0, 0)))
        if mask_bs is not None:
            mask_bs = jnp.pad(mask_bs, ((0, pad), (0, 0)), constant_values=1.0)
    else:
        last_hidden_p = last_hidden

    lp, hs = decoder_steps_pallas(packed, word_emb, last_hidden_p,
                                  ctx_bsc, ctx_p, mask_bs)
    return lp[:, :B, :], hs[:, :B, :]


def liumcvc_decoder_forward(packed, word_input, last_hidden, encoder_outputs,
                            ctx_mask=None):
    """Single decoding step == the PyTorch module's forward()."""
    lp, hs = liumcvc_decoder_steps(packed, word_input.reshape(1, -1),
                                   last_hidden, encoder_outputs, ctx_mask)
    return lp[0], hs[0]


# ----------------------------------------------------------------------------
# Parameters: raw (mirrors the module) and packed (kernel slabs, with folds).
# ----------------------------------------------------------------------------
def init_raw_params(key, V, E, H, C):
    ks = jax.random.split(key, 16)
    u = lambda k, shape, s=0.1: jax.random.uniform(k, shape, jnp.float32, -s, s)
    return {
        "emb_table": u(ks[0], (V, E)).at[0].set(0.0),     # padding_idx=0
        # GRUCell weights stored (in, 3H), gate order (r, z, n)
        "Wih1": u(ks[1], (E, 3 * H)), "Whh1": u(ks[2], (H, 3 * H)),
        "Wih2": u(ks[3], (H, 3 * H)), "Whh2": u(ks[4], (H, 3 * H)),
        "bih1": u(ks[5], (1, 3 * H)), "bhh1": u(ks[6], (1, 3 * H)),
        "bih2": u(ks[7], (1, 3 * H)), "bhh2": u(ks[8], (1, 3 * H)),
        # Attention (att_bottleneck='ctx' -> mid_dim = C), Linear(bias=False)
        "ctx2ctx": u(ks[9], (C, C)),
        "hid2ctx": u(ks[10], (H, C)),
        "mlp": u(ks[11], (1, C)),
        "ctx2hid": u(ks[12], (C, H)),
        # hid2out = FF(H, E, bias_zero=True, activ='tanh'); out = FF(E, V)
        "h2o_w": u(ks[13], (H, E)), "h2o_b": jnp.zeros((1, E), jnp.float32),
        "out_w": u(ks[14], (E, V)), "out_b": u(ks[15], (1, V)),
    }


def pack_params(raw):
    """Pack raw module weights into the kernel slabs (exact algebraic folds)."""
    E = raw["Wih1"].shape[0]
    H = raw["Whh1"].shape[0]
    C = raw["ctx2hid"].shape[0]
    # Fold ctx2hid into GRU2's input projection (wctx @ ctx2hid) @ Wih2.
    wih2_fused = raw["ctx2hid"] @ raw["Wih2"]                     # (C, 3H)
    gru = jnp.concatenate(
        [raw["Wih1"], raw["Whh1"], wih2_fused,
         raw["bih1"], raw["bhh1"], raw["bih2"], raw["bhh2"]], axis=0)
    # [hid2ctx | Whh2] fused along lanes; mlp row appended (padded with zeros).
    h1w = jnp.concatenate(
        [jnp.concatenate([raw["hid2ctx"], raw["Whh2"]], axis=1),
         jnp.concatenate([raw["mlp"], jnp.zeros((1, 3 * H), jnp.float32)], axis=1)],
        axis=0)
    h2o = jnp.concatenate([raw["h2o_w"], raw["h2o_b"]], axis=0)
    out = jnp.concatenate([raw["out_w"], raw["out_b"]], axis=0)
    return {"emb_table": raw["emb_table"], "ctx2ctx": raw["ctx2ctx"],
            "gru": gru, "h1w": h1w, "h2o": h2o, "out": out}


# ----------------------------------------------------------------------------
# Plain-JAX reference (mirrors the PyTorch forward, seq-major, unfused)
# ----------------------------------------------------------------------------
def decoder_step_reference(raw, word_emb, last_hidden, encoder_outputs, ctx_mask):
    H = last_hidden.shape[1]

    def gru(x, h, wih, whh, bih, bhh):
        gx = x @ wih + bih
        gh = h @ whh + bhh
        r = jax.nn.sigmoid(gx[:, 0:H] + gh[:, 0:H])
        z = jax.nn.sigmoid(gx[:, H:2 * H] + gh[:, H:2 * H])
        n = jnp.tanh(gx[:, 2 * H:] + r * gh[:, 2 * H:])
        return (1.0 - z) * n + z * h

    h1 = gru(word_emb, last_hidden, raw["Wih1"], raw["Whh1"],
             raw["bih1"], raw["bhh1"])

    ctx_ = encoder_outputs @ raw["ctx2ctx"]                        # (S, B, C)
    hid_ = h1 @ raw["hid2ctx"]                                     # (B, C)
    scores = jnp.sum(jnp.tanh(ctx_ + hid_[None, :, :])
                     * raw["mlp"][0][None, None, :], axis=-1)      # (S, B)
    e = jnp.exp(scores - jnp.max(scores, axis=0, keepdims=True))
    if ctx_mask is not None:
        e = e * ctx_mask
    alpha = e / jnp.sum(e, axis=0, keepdims=True)
    wctx = jnp.sum(alpha[:, :, None] * encoder_outputs, axis=0)    # (B, C)
    z_t = wctx @ raw["ctx2hid"]

    h2 = gru(z_t, h1, raw["Wih2"], raw["Whh2"], raw["bih2"], raw["bhh2"])
    logit = jnp.tanh(h2 @ raw["h2o_w"] + raw["h2o_b"])
    out = logit @ raw["out_w"] + raw["out_b"]
    return jax.nn.log_softmax(out, axis=-1), h2


if __name__ == "__main__":
    V, E, H, C = 128, 32, 32, 48   # output_size, embedding, hidden, context dims
    S, B, T = 8, 2, 3              # source length, batch, decode steps

    key = jax.random.PRNGKey(0)
    k_par, k_word, k_hid, k_enc = jax.random.split(key, 4)

    raw = init_raw_params(k_par, V, E, H, C)
    packed = pack_params(raw)

    word_inputs = jax.random.randint(k_word, (T, B), 1, V, dtype=jnp.int32)
    last_hidden = jax.random.normal(k_hid, (B, H), jnp.float32)
    encoder_outputs = jax.random.normal(k_enc, (S, B, C), jnp.float32)

    # Reference: T teacher-forced single-step forwards (exactly the PyTorch math).
    ref_lps, ref_hs = [], []
    h = last_hidden
    for t in range(T):
        emb_t = jnp.take(raw["emb_table"], word_inputs[t], axis=0)
        lp_t, h = decoder_step_reference(raw, emb_t, h, encoder_outputs, None)
        ref_lps.append(np.asarray(lp_t))
        ref_hs.append(np.asarray(h))
    ref_lp = np.stack(ref_lps)
    ref_h = np.stack(ref_hs)

    # Pallas: all T steps in a single pallas_call (weights & encoder state resident).
    log_probs, hiddens = liumcvc_decoder_steps(packed, word_inputs, last_hidden,
                                               encoder_outputs, ctx_mask=None)
    jax.block_until_ready((log_probs, hiddens))
    np.testing.assert_allclose(np.asarray(log_probs), ref_lp, rtol=1e-4, atol=1e-4)
    np.testing.assert_allclose(np.asarray(hiddens), ref_h, rtol=1e-4, atol=1e-4)
    assert log_probs.shape == (T, B, V) and hiddens.shape == (T, B, H)

    # Single-step module-forward API (T=1 path).
    lp1, h1 = liumcvc_decoder_forward(packed, word_inputs[0], last_hidden,
                                      encoder_outputs)
    jax.block_until_ready((lp1, h1))
    np.testing.assert_allclose(np.asarray(lp1), ref_lp[0], rtol=1e-4, atol=1e-4)
    np.testing.assert_allclose(np.asarray(h1), ref_h[0], rtol=1e-4, atol=1e-4)

    # Masked-attention variant (exercises the has_mask kernel specialization).
    ctx_mask = jnp.ones((S, B), jnp.float32).at[S - 2:, 1].set(0.0)
    emb0 = jnp.take(raw["emb_table"], word_inputs[0], axis=0)
    ref_lp_m, ref_h_m = decoder_step_reference(raw, emb0, last_hidden,
                                               encoder_outputs, ctx_mask)
    lp_m, h_m = liumcvc_decoder_forward(packed, word_inputs[0], last_hidden,
                                        encoder_outputs, ctx_mask)
    jax.block_until_ready((lp_m, h_m))
    np.testing.assert_allclose(np.asarray(lp_m), np.asarray(ref_lp_m),
                               rtol=1e-4, atol=1e-4)
    np.testing.assert_allclose(np.asarray(h_m), np.asarray(ref_h_m),
                               rtol=1e-4, atol=1e-4)

    print("KERNEL_OK")
</pallas_src>

<mosaic_0001>
module attributes {stable_mosaic.version = 11 : i64} {
  func.func @kernel(%arg0: i32, %arg1: memref<1x8x32xf32, #tpu.memory_space<vmem>>, %arg2: memref<8x32xf32, #tpu.memory_space<vmem>>, %arg3: memref<8x8x48xf32, #tpu.memory_space<vmem>>, %arg4: memref<8x8x48xf32, #tpu.memory_space<vmem>>, %arg5: memref<116x96xf32, #tpu.memory_space<vmem>>, %arg6: memref<33x144xf32, #tpu.memory_space<vmem>>, %arg7: memref<33x32xf32, #tpu.memory_space<vmem>>, %arg8: memref<33x128xf32, #tpu.memory_space<vmem>>, %arg9: memref<1x8x128xf32, #tpu.memory_space<vmem>>, %arg10: memref<1x8x32xf32, #tpu.memory_space<vmem>>, %arg11: memref<8x32xf32, #tpu.memory_space<vmem>>) attributes {dimension_semantics = [#tpu.dimension_semantics<arbitrary>], iteration_bounds = array<i64: 3>, scalar_prefetch = 0 : i64, scratch_operands = 1 : i64, tpu.core_type = #tpu.core_type<tc>, window_params = [{transform_indices = @transform_0, window_bounds = array<i64: 1, 8, 32>}, {pipeline_mode = #tpu.pipeline_mode<synchronous>, transform_indices = @transform_1, window_bounds = array<i64: 8, 32>}, {pipeline_mode = #tpu.pipeline_mode<synchronous>, transform_indices = @transform_2, window_bounds = array<i64: 8, 8, 48>}, {pipeline_mode = #tpu.pipeline_mode<synchronous>, transform_indices = @transform_3, window_bounds = array<i64: 8, 8, 48>}, {pipeline_mode = #tpu.pipeline_mode<synchronous>, transform_indices = @transform_4, window_bounds = array<i64: 116, 96>}, {pipeline_mode = #tpu.pipeline_mode<synchronous>, transform_indices = @transform_5, window_bounds = array<i64: 33, 144>}, {pipeline_mode = #tpu.pipeline_mode<synchronous>, transform_indices = @transform_6, window_bounds = array<i64: 33, 32>}, {pipeline_mode = #tpu.pipeline_mode<synchronous>, transform_indices = @transform_7, window_bounds = array<i64: 33, 128>}, {transform_indices = @transform_8, window_bounds = array<i64: 1, 8, 128>}, {transform_indices = @transform_9, window_bounds = array<i64: 1, 8, 32>}]} {
    %c0_i32 = arith.constant 0 : i32
    %0 = arith.cmpi eq, %arg0, %c0_i32 : i32
    %1 = arith.extui %0 : i1 to i32
    %c0_i32_0 = arith.constant 0 : i32
    %2 = arith.cmpi ne, %1, %c0_i32_0 : i32
    scf.if %2 {
      %c0_56 = arith.constant 0 : index
      %c0_57 = arith.constant 0 : index
      %133 = vector.load %arg2[%c0_56, %c0_57] : memref<8x32xf32, #tpu.memory_space<vmem>>, vector<8x32xf32>
      %c0_58 = arith.constant 0 : index
      %c0_59 = arith.constant 0 : index
      %134 = vector.load %arg11[%c0_58, %c0_59] : memref<8x32xf32, #tpu.memory_space<vmem>>, vector<8x32xf32>
      tpu.vector_store %arg11[%c0_58, %c0_59], %133 {strides = array<i32>} : memref<8x32xf32, #tpu.memory_space<vmem>>, vector<8x32xf32>,
    } else {
    }
    %c0 = arith.constant 0 : index
    %c0_1 = arith.constant 0 : index
    %c0_2 = arith.constant 0 : index
    %3 = vector.load %arg1[%c0, %c0_1, %c0_2] : memref<1x8x32xf32, #tpu.memory_space<vmem>>, vector<1x8x32xf32>
    %4 = vector.shape_cast %3 : vector<1x8x32xf32> to vector<8x32xf32>
    %c0_3 = arith.constant 0 : index
    %c0_4 = arith.constant 0 : index
    %5 = vector.load %arg11[%c0_3, %c0_4] : memref<8x32xf32, #tpu.memory_space<vmem>>, vector<8x32xf32>
    %c0_5 = arith.constant 0 : index
    %c0_6 = arith.constant 0 : index
    %6 = vector.load %arg5[%c0_5, %c0_6] : memref<116x96xf32, #tpu.memory_space<vmem>>, vector<32x96xf32>
    %cst = arith.constant dense<0.000000e+00> : vector<8x96xf32>
    %7 = tpu.matmul %4, %6, %cst {dimension_numbers = #tpu.dot_dimension_numbers<[1], [0], [0], [1], [0, 0, 1, 1], [], []>} : vector<8x32xf32>, vector<32x96xf32>, vector<8x96xf32> -> vector<8x96xf32>
    %c112 = arith.constant 112 : index
    %c0_7 = arith.constant 0 : index
    %8 = vector.load %arg5[%c112, %c0_7] : memref<116x96xf32, #tpu.memory_space<vmem>>, vector<1x96xf32>
    %9 = vector.broadcast %8 : vector<1x96xf32> to vector<8x96xf32>
    %10 = arith.addf %7, %9 : vector<8x96xf32>
    %c32 = arith.constant 32 : index
    %c0_8 = arith.constant 0 : index
    %11 = vector.load %arg5[%c32, %c0_8] : memref<116x96xf32, #tpu.memory_space<vmem>>, vector<32x96xf32>
    %cst_9 = arith.constant dense<0.000000e+00> : vector<8x96xf32>
    %12 = tpu.matmul %5, %11, %cst_9 {dimension_numbers = #tpu.dot_dimension_numbers<[1], [0], [0], [1], [0, 0, 1, 1], [], []>} : vector<8x32xf32>, vector<32x96xf32>, vector<8x96xf32> -> vector<8x96xf32>
    %c113 = arith.constant 113 : index
    %c0_10 = arith.constant 0 : index
    %13 = vector.load %arg5[%c113, %c0_10] : memref<116x96xf32, #tpu.memory_space<vmem>>, vector<1x96xf32>
    %14 = vector.broadcast %13 : vector<1x96xf32> to vector<8x96xf32>
    %15 = arith.addf %12, %14 : vector<8x96xf32>
    %16 = vector.extract_strided_slice %10 {offsets = [0, 0], sizes = [8, 32], strides = [1, 1]} : vector<8x96xf32> to vector<8x32xf32>
    %17 = vector.extract_strided_slice %15 {offsets = [0, 0], sizes = [8, 32], strides = [1, 1]} : vector<8x96xf32> to vector<8x32xf32>
    %18 = arith.addf %16, %17 : vector<8x32xf32>
    %19 = arith.negf %18 : vector<8x32xf32>
    %20 = math.exp %19 : vector<8x32xf32>
    %cst_11 = arith.constant 1.000000e+00 : f32
    %21 = vector.broadcast %cst_11 : f32 to vector<8x32xf32>
    %22 = arith.addf %21, %20 : vector<8x32xf32>
    %23 = arith.divf %21, %22 : vector<8x32xf32>
    %24 = vector.extract_strided_slice %10 {offsets = [0, 32], sizes = [8, 32], strides = [1, 1]} : vector<8x96xf32> to vector<8x32xf32>
    %25 = vector.extract_strided_slice %15 {offsets = [0, 32], sizes = [8, 32], strides = [1, 1]} : vector<8x96xf32> to vector<8x32xf32>
    %26 = arith.addf %24, %25 : vector<8x32xf32>
    %27 = arith.negf %26 : vector<8x32xf32>
    %28 = math.exp %27 : vector<8x32xf32>
    %cst_12 = arith.constant 1.000000e+00 : f32
    %29 = vector.broadcast %cst_12 : f32 to vector<8x32xf32>
    %30 = arith.addf %29, %28 : vector<8x32xf32>
    %31 = arith.divf %29, %30 : vector<8x32xf32>
    %32 = vector.extract_strided_slice %10 {offsets = [0, 64], sizes = [8, 32], strides = [1, 1]} : vector<8x96xf32> to vector<8x32xf32>
    %33 = vector.extract_strided_slice %15 {offsets = [0, 64], sizes = [8, 32], strides = [1, 1]} : vector<8x96xf32> to vector<8x32xf32>
    %34 = arith.mulf %23, %33 : vector<8x32xf32>
    %35 = arith.addf %32, %34 : vector<8x32xf32>
    %36 = math.tanh %35 : vector<8x32xf32>
    %cst_13 = arith.constant 1.000000e+00 : f32
    %37 = vector.broadcast %cst_13 : f32 to vector<8x32xf32>
    %38 = arith.subf %37, %31 : vector<8x32xf32>
    %39 = arith.mulf %38, %36 : vector<8x32xf32>
    %40 = arith.mulf %31, %5 : vector<8x32xf32>
    %41 = arith.addf %39, %40 : vector<8x32xf32>
    %c0_14 = arith.constant 0 : index
    %c0_15 = arith.constant 0 : index
    %42 = vector.load %arg6[%c0_14, %c0_15] : memref<33x144xf32, #tpu.memory_space<vmem>>, vector<32x144xf32>
    %cst_16 = arith.constant dense<0.000000e+00> : vector<8x144xf32>
    %43 = tpu.matmul %41, %42, %cst_16 {dimension_numbers = #tpu.dot_dimension_numbers<[1], [0], [0], [1], [0, 0, 1, 1], [], []>} : vector<8x32xf32>, vector<32x144xf32>, vector<8x144xf32> -> vector<8x144xf32>
    %44 = vector.extract_strided_slice %43 {offsets = [0, 0], sizes = [8, 48], strides = [1, 1]} : vector<8x144xf32> to vector<8x48xf32>
    %45 = vector.extract_strided_slice %43 {offsets = [0, 48], sizes = [8, 96], strides = [1, 1]} : vector<8x144xf32> to vector<8x96xf32>
    %c115 = arith.constant 115 : index
    %c0_17 = arith.constant 0 : index
    %46 = vector.load %arg5[%c115, %c0_17] : memref<116x96xf32, #tpu.memory_space<vmem>>, vector<1x96xf32>
    %47 = vector.broadcast %46 : vector<1x96xf32> to vector<8x96xf32>
    %48 = arith.addf %45, %47 : vector<8x96xf32>
    %c0_18 = arith.constant 0 : index
    %c0_19 = arith.constant 0 : index
    %c0_20 = arith.constant 0 : index
    %49 = vector.load %arg4[%c0_18, %c0_19, %c0_20] : memref<8x8x48xf32, #tpu.memory_space<vmem>>, vector<8x8x48xf32>
    %50 = vector.shape_cast %44 : vector<8x48xf32> to vector<8x1x48xf32>
    %51 = vector.broadcast %50 : vector<8x1x48xf32> to vector<8x8x48xf32>
    %52 = arith.addf %49, %51 : vector<8x8x48xf32>
    %53 = math.tanh %52 : vector<8x8x48xf32>
    %c32_21 = arith.constant 32 : index
    %c0_22 = arith.constant 0 : index
    %54 = vector.load %arg6[%c32_21, %c0_22] : memref<33x144xf32, #tpu.memory_space<vmem>>, vector<1x48xf32>
    %55 = vector.shape_cast %54 : vector<1x48xf32> to vector<1x1x48xf32>
    %56 = vector.broadcast %55 : vector<1x1x48xf32> to vector<8x8x48xf32>
    %57 = arith.mulf %53, %56 : vector<8x8x48xf32>
    %cst_23 = arith.constant dense<0.000000e+00> : vector<8x8xf32>
    %58 = vector.multi_reduction <add>, %57, %cst_23 [2] : vector<8x8x48xf32> to vector<8x8xf32>
    %cst_24 = arith.constant dense<0xFF800000> : vector<8xf32>
    %59 = vector.multi_reduction <maximumf>, %58, %cst_24 [1] : vector<8x8xf32> to vector<8xf32>
    %60 = vector.shape_cast %59 : vector<8xf32> to vector<8x1xf32>
    %61 = vector.broadcast %60 : vector<8x1xf32> to vector<8x8xf32>
    %62 = arith.subf %58, %61 : vector<8x8xf32>
    %63 = math.exp %62 : vector<8x8xf32>
    %cst_25 = arith.constant dense<0.000000e+00> : vector<8xf32>
    %64 = vector.multi_reduction <add>, %63, %cst_25 [1] : vector<8x8xf32> to vector<8xf32>
    %65 = vector.shape_cast %64 : vector<8xf32> to vector<8x1xf32>
    %66 = vector.broadcast %65 : vector<8x1xf32> to vector<8x8xf32>
    %67 = arith.divf %63, %66 : vector<8x8xf32>
    %68 = vector.shape_cast %67 : vector<8x8xf32> to vector<8x8x1xf32>
    %c0_26 = arith.constant 0 : index
    %c0_27 = arith.constant 0 : index
    %c0_28 = arith.constant 0 : index
    %69 = vector.load %arg3[%c0_26, %c0_27, %c0_28] : memref<8x8x48xf32, #tpu.memory_space<vmem>>, vector<8x8x48xf32>
    %70 = vector.broadcast %68 : vector<8x8x1xf32> to vector<8x8x48xf32>
    %71 = arith.mulf %70, %69 : vector<8x8x48xf32>
    %cst_29 = arith.constant dense<0.000000e+00> : vector<8x48xf32>
    %72 = vector.multi_reduction <add>, %71, %cst_29 [1] : vector<8x8x48xf32> to vector<8x48xf32>
    %c64 = arith.constant 64 : index
    %c0_30 = arith.constant 0 : index
    %73 = vector.load %arg5[%c64, %c0_30] : memref<116x96xf32, #tpu.memory_space<vmem>>, vector<48x96xf32>
    %cst_31 = arith.constant dense<0.000000e+00> : vector<8x96xf32>
    %74 = tpu.matmul %72, %73, %cst_31 {dimension_numbers = #tpu.dot_dimension_numbers<[1], [0], [0], [1], [0, 0, 1, 1], [], []>} : vector<8x48xf32>, vector<48x96xf32>, vector<8x96xf32> -> vector<8x96xf32>
    %c114 = arith.constant 114 : index
    %c0_32 = arith.constant 0 : index
    %75 = vector.load %arg5[%c114, %c0_32] : memref<116x96xf32, #tpu.memory_space<vmem>>, vector<1x96xf32>
    %76 = vector.broadcast %75 : vector<1x96xf32> to vector<8x96xf32>
    %77 = arith.addf %74, %76 : vector<8x96xf32>
    %78 = vector.extract_strided_slice %77 {offsets = [0, 0], sizes = [8, 32], strides = [1, 1]} : vector<8x96xf32> to vector<8x32xf32>
    %79 = vector.extract_strided_slice %48 {offsets = [0, 0], sizes = [8, 32], strides = [1, 1]} : vector<8x96xf32> to vector<8x32xf32>
    %80 = arith.addf %78, %79 : vector<8x32xf32>
    %81 = arith.negf %80 : vector<8x32xf32>
    %82 = math.exp %81 : vector<8x32xf32>
    %cst_33 = arith.constant 1.000000e+00 : f32
    %83 = vector.broadcast %cst_33 : f32 to vector<8x32xf32>
    %84 = arith.addf %83, %82 : vector<8x32xf32>
    %85 = arith.divf %83, %84 : vector<8x32xf32>
    %86 = vector.extract_strided_slice %77 {offsets = [0, 32], sizes = [8, 32], strides = [1, 1]} : vector<8x96xf32> to vector<8x32xf32>
    %87 = vector.extract_strided_slice %48 {offsets = [0, 32], sizes = [8, 32], strides = [1, 1]} : vector<8x96xf32> to vector<8x32xf32>
    %88 = arith.addf %86, %87 : vector<8x32xf32>
    %89 = arith.negf %88 : vector<8x32xf32>
    %90 = math.exp %89 : vector<8x32xf32>
    %cst_34 = arith.constant 1.000000e+00 : f32
    %91 = vector.broadcast %cst_34 : f32 to vector<8x32xf32>
    %92 = arith.addf %91, %90 : vector<8x32xf32>
    %93 = arith.divf %91, %92 : vector<8x32xf32>
    %94 = vector.extract_strided_slice %77 {offsets = [0, 64], sizes = [8, 32], strides = [1, 1]} : vector<8x96xf32> to vector<8x32xf32>
    %95 = vector.extract_strided_slice %48 {offsets = [0, 64], sizes = [8, 32], strides = [1, 1]} : vector<8x96xf32> to vector<8x32xf32>
    %96 = arith.mulf %85, %95 : vector<8x32xf32>
    %97 = arith.addf %94, %96 : vector<8x32xf32>
    %98 = math.tanh %97 : vector<8x32xf32>
    %cst_35 = arith.constant 1.000000e+00 : f32
    %99 = vector.broadcast %cst_35 : f32 to vector<8x32xf32>
    %100 = arith.subf %99, %93 : vector<8x32xf32>
    %101 = arith.mulf %100, %98 : vector<8x32xf32>
    %102 = arith.mulf %93, %41 : vector<8x32xf32>
    %103 = arith.addf %101, %102 : vector<8x32xf32>
    %c0_36 = arith.constant 0 : index
    %c0_37 = arith.constant 0 : index
    %104 = vector.load %arg11[%c0_36, %c0_37] : memref<8x32xf32, #tpu.memory_space<vmem>>, vector<8x32xf32>
    tpu.vector_store %arg11[%c0_36, %c0_37], %103 {strides = array<i32>} : memref<8x32xf32, #tpu.memory_space<vmem>>, vector<8x32xf32>,
    %c0_38 = arith.constant 0 : index
    %c0_39 = arith.constant 0 : index
    %c0_40 = arith.constant 0 : index
    %105 = vector.load %arg10[%c0_38, %c0_39, %c0_40] : memref<1x8x32xf32, #tpu.memory_space<vmem>>, vector<1x8x32xf32>
    %106 = vector.shape_cast %105 : vector<1x8x32xf32> to vector<8x32xf32>
    %107 = vector.shape_cast %103 : vector<8x32xf32> to vector<1x8x32xf32>
    tpu.vector_store %arg10[%c0_38, %c0_39, %c0_40], %107 {strides = array<i32>} : memref<1x8x32xf32, #tpu.memory_space<vmem>>, vector<1x8x32xf32>,
    %c0_41 = arith.constant 0 : index
    %c0_42 = arith.constant 0 : index
    %108 = vector.load %arg7[%c0_41, %c0_42] : memref<33x32xf32, #tpu.memory_space<vmem>>, vector<32x32xf32>
    %cst_43 = arith.constant dense<0.000000e+00> : vector<8x32xf32>
    %109 = tpu.matmul %103, %108, %cst_43 {dimension_numbers = #tpu.dot_dimension_numbers<[1], [0], [0], [1], [0, 0, 1, 1], [], []>} : vector<8x32xf32>, vector<32x32xf32>, vector<8x32xf32> -> vector<8x32xf32>
    %c32_44 = arith.constant 32 : index
    %c0_45 = arith.constant 0 : index
    %110 = vector.load %arg7[%c32_44, %c0_45] : memref<33x32xf32, #tpu.memory_space<vmem>>, vector<1x32xf32>
    %111 = vector.broadcast %110 : vector<1x32xf32> to vector<8x32xf32>
    %112 = arith.addf %109, %111 : vector<8x32xf32>
    %113 = math.tanh %112 : vector<8x32xf32>
    %c0_46 = arith.constant 0 : index
    %c0_47 = arith.constant 0 : index
    %114 = vector.load %arg8[%c0_46, %c0_47] : memref<33x128xf32, #tpu.memory_space<vmem>>, vector<32x128xf32>
    %cst_48 = arith.constant dense<0.000000e+00> : vector<8x128xf32>
    %115 = tpu.matmul %113, %114, %cst_48 {dimension_numbers = #tpu.dot_dimension_numbers<[1], [0], [0], [1], [0, 0, 1, 1], [], []>} : vector<8x32xf32>, vector<32x128xf32>, vector<8x128xf32> -> vector<8x128xf32>
    %c32_49 = arith.constant 32 : index
    %c0_50 = arith.constant 0 : index
    %116 = vector.load %arg8[%c32_49, %c0_50] : memref<33x128xf32, #tpu.memory_space<vmem>>, vector<1x128xf32>
    %117 = vector.broadcast %116 : vector<1x128xf32> to vector<8x128xf32>
    %118 = arith.addf %115, %117 : vector<8x128xf32>
    %cst_51 = arith.constant dense<0xFF800000> : vector<8xf32>
    %119 = vector.multi_reduction <maximumf>, %118, %cst_51 [1] : vector<8x128xf32> to vector<8xf32>
    %120 = vector.shape_cast %119 : vector<8xf32> to vector<8x1xf32>
    %121 = vector.broadcast %120 : vector<8x1xf32> to vector<8x128xf32>
    %122 = arith.subf %118, %121 : vector<8x128xf32>
    %123 = math.exp %122 : vector<8x128xf32>
    %cst_52 = arith.constant dense<0.000000e+00> : vector<8xf32>
    %124 = vector.multi_reduction <add>, %123, %cst_52 [1] : vector<8x128xf32> to vector<8xf32>
    %125 = vector.shape_cast %124 : vector<8xf32> to vector<8x1xf32>
    %126 = math.log %125 : vector<8x1xf32>
    %127 = arith.addf %126, %120 : vector<8x1xf32>
    %128 = vector.broadcast %127 : vector<8x1xf32> to vector<8x128xf32>
    %129 = arith.subf %118, %128 : vector<8x128xf32>
    %c0_53 = arith.constant 0 : index
    %c0_54 = arith.constant 0 : index
    %c0_55 = arith.constant 0 : index
    %130 = vector.load %arg9[%c0_53, %c0_54, %c0_55] : memref<1x8x128xf32, #tpu.memory_space<vmem>>, vector<1x8x128xf32>
    %131 = vector.shape_cast %130 : vector<1x8x128xf32> to vector<8x128xf32>
    %132 = vector.shape_cast %129 : vector<8x128xf32> to vector<1x8x128xf32>
    tpu.vector_store %arg9[%c0_53, %c0_54, %c0_55], %132 {strides = array<i32>} : memref<1x8x128xf32, #tpu.memory_space<vmem>>, vector<1x8x128xf32>,
    return
  }
  func.func @transform_0(%arg0: i32) -> (i32, i32, i32) {
    %c0_i32 = arith.constant 0 : i32
    %c0_i32_0 = arith.constant 0 : i32
    %c0_i32_1 = arith.constant 0 : i32
    return %arg0, %c0_i32, %c0_i32_0 : i32, i32, i32
  }
  func.func @transform_1(%arg0: i32) -> (i32, i32) {
    %c0_i32 = arith.constant 0 : i32
    %c0_i32_0 = arith.constant 0 : i32
    %c0_i32_1 = arith.constant 0 : i32
    return %c0_i32, %c0_i32_0 : i32, i32
  }
  func.func @transform_2(%arg0: i32) -> (i32, i32, i32) {
    %c0_i32 = arith.constant 0 : i32
    %c0_i32_0 = arith.constant 0 : i32
    %c0_i32_1 = arith.constant 0 : i32
    %c0_i32_2 = arith.constant 0 : i32
    return %c0_i32, %c0_i32_0, %c0_i32_1 : i32, i32, i32
  }
  func.func @transform_3(%arg0: i32) -> (i32, i32, i32) {
    %c0_i32 = arith.constant 0 : i32
    %c0_i32_0 = arith.constant 0 : i32
    %c0_i32_1 = arith.constant 0 : i32
    %c0_i32_2 = arith.constant 0 : i32
    return %c0_i32, %c0_i32_0, %c0_i32_1 : i32, i32, i32
  }
  func.func @transform_4(%arg0: i32) -> (i32, i32) {
    %c0_i32 = arith.constant 0 : i32
    %c0_i32_0 = arith.constant 0 : i32
    %c0_i32_1 = arith.constant 0 : i32
    return %c0_i32, %c0_i32_0 : i32, i32
  }
  func.func @transform_5(%arg0: i32) -> (i32, i32) {
    %c0_i32 = arith.constant 0 : i32
    %c0_i32_0 = arith.constant 0 : i32
    %c0_i32_1 = arith.constant 0 : i32
    return %c0_i32, %c0_i32_0 : i32, i32
  }
  func.func @transform_6(%arg0: i32) -> (i32, i32) {
    %c0_i32 = arith.constant 0 : i32
    %c0_i32_0 = arith.constant 0 : i32
    %c0_i32_1 = arith.constant 0 : i32
    return %c0_i32, %c0_i32_0 : i32, i32
  }
  func.func @transform_7(%arg0: i32) -> (i32, i32) {
    %c0_i32 = arith.constant 0 : i32
    %c0_i32_0 = arith.constant 0 : i32
    %c0_i32_1 = arith.constant 0 : i32
    return %c0_i32, %c0_i32_0 : i32, i32
  }
  func.func @transform_8(%arg0: i32) -> (i32, i32, i32) {
    %c0_i32 = arith.constant 0 : i32
    %c0_i32_0 = arith.constant 0 : i32
    %c0_i32_1 = arith.constant 0 : i32
    return %arg0, %c0_i32, %c0_i32_0 : i32, i32, i32
  }
  func.func @transform_9(%arg0: i32) -> (i32, i32, i32) {
    %c0_i32 = arith.constant 0 : i32
    %c0_i32_0 = arith.constant 0 : i32
    %c0_i32_1 = arith.constant 0 : i32
    return %arg0, %c0_i32, %c0_i32_0 : i32, i32, i32
  }
}

</mosaic_0001>

<bundles_post_ra>
// kernel: tpu_custom_call.1
= control target key start
LH: loop header
LB: loop body
LE: loop exit
PB: predicated region body
PF: predicated region fallthrough
CT: control target
= control target key end

     0   :  { %s2531_s0 = inlined_call_operand.vmem [shape: f32[3,8,32], index: 0, kind: input, shape index: {}]   ;;  %s2532_s1 = inlined_call_operand.vmem [shape: f32[8,32], index: 1, kind: input, shape index: {}]   ;;  %s2533_s2 = inlined_call_operand.vmem [shape: f32[8,8,48], index: 2, kind: input, shape index: {}]   ;;  %s2534_s3 = inlined_call_operand.vmem [shape: f32[8,8,48], index: 3, kind: input, shape index: {}]   ;;  %s2535_s4 = inlined_call_operand.vmem [shape: f32[116,96], index: 4, kind: input, shape index: {}]   ;;  %s2536_s5 = inlined_call_operand.vmem [shape: f32[33,144], index: 5, kind: input, shape index: {}]   ;;  %s2537_s6 = inlined_call_operand.vmem [shape: f32[33,32], index: 6, kind: input, shape index: {}]   ;;  %s2538_s7 = inlined_call_operand.vmem [shape: f32[33,128], index: 7, kind: input, shape index: {}]   ;;  %s2539_s8 = inlined_call_operand.hbm [shape: f32[3,8,128], index: 8, kind: output, shape index: {0}]   ;;  %s2540_s9 = inlined_call_operand.hbm [shape: f32[3,8,32], index: 9, kind: output, shape index: {1}]  }
   0x1   :  { %2542 = sst [smem:[#allocation9_spill]] %s2531_s0 }
   0x2   :  { %2543 = sst [smem:[#allocation10_spill]] %s2532_s1 }
   0x3   :  { %15 = vsyncpa [#allocation4], 0 }
   0x4   :  { %17 = vsyncpa [#allocation4 + $0x1], 0 }
   0x5   :  { %18 = vsyncpa [#allocation6], 0 }
   0x6   :  { %20 = vsyncpa [#allocation6 + $0x1], 0  ;;  %s2029_s30 = smov 0   ;;  %s2031_s10 = smov 0  }
   0x7   :  { %s2033_s11 = smov 0   ;;  %s2035_s12 = smov 0  }
   0x8 LB: > { %s2050_s13 = sadd.s32 4294967295, %s1964_s12   ;;  %s1592_s14 = sadd.s32 4294967294, %s1964_s12   ;;  %s1964_s12 = sphi %s2035_s12, %s2552_s12   ;;  %s1960_s11 = sphi %s2033_s11, %s2551_s11   ;;  %s1956_s10 = sphi %s2031_s10, %s2550_s10   ;;  %s1952_s30 = sphi %s2029_s30, %s2549_s30  }
   0x9   : > { %s2054_s15 = sadd.s32 1, %s1964_s12   ;;  %s206_s16 = sadd.s32 1, %s1960_s11 }
   0xa   : > { %s203_s17 = ssub.s32 %s1964_s12, %s2054_s15  ;;  %p216_p0 = scmp.ne.s32.totalorder %s1960_s11, %s1956_s10 }
   0xb   : > { %p204_p1 = scmp.eq.s32.totalorder %s203_s17, 0  ;;  %p217_p2 = scmp.eq.s32.totalorder %s2050_s13, 2 }
   0xc   : > { %p222_p3 = scmp.ne.s32.totalorder %s1956_s10, %s1952_s30  ;;  %p223_p4 = scmp.eq.s32.totalorder %s1592_s14, 2 }
   0xd   : > { %s2065_s18 = scalar_select %p204_p1, %s1960_s11, %s206_s16  }
   0xe   : > { %p2067_p5 = por %p217_p2, %p216_p0  ;;  %p2071_p6 = por %p223_p4, %p222_p3 }
   0xf   : > { %p1595_p7 = scmp.ge.s32.totalorder %s1964_s12, 1  ;;  %p295_p8 = scmp.lt.s32.totalorder %s1964_s12, 4 }
  0x11   : > { %p296_p9 = pnand %p1595_p7, %p295_p8 }
  0x12   : > { %s2078_s21 = sand.u32 (!%p296_p9), 1, %s1956_s10   ;;  %p335_p10 = scmp.lt.s32.totalorder (!%p296_p9), %s2050_s13, 2 }
  0x13   : > { %299 = sbr.rel (%p296_p9) target bundleno = 3157 (0xc55), region = 52  ;;  %s1596_s22 = sshll.u32 (!%p296_p9), %s2078_s21, 3 }
  0x14   : > { %s2546_s0 = sld [smem:[#allocation9_spill]] (!%p296_p9)  ;;  %s2088_s28 = scalar_lea.vmem (!%p296_p9), [#allocation3], %s1596_s22 }
  0x15   : > { %s2090_s29 = scalar_lea.vmem (!%p296_p9), [#allocation5], %s1596_s22  ;;  %p1599_p11 = scmp.ne.s32.totalorder (!%p296_p9), %s2050_s13, 0 }
  0x1a   : > { %s336_s23 = scalar_select %p335_p10, %s2050_s13, 2 }
  0x1b   : > { %342 = sbr.rel (%p1599_p11) target bundleno = 35 (0x23), region = 56  ;;  %s2547_s1 = sld [smem:[#allocation10_spill]] (!%p1599_p11)  ;;  %vm344_vm0 = vcmask (!%p1599_p11), 261120  }
  0x1c   : > { %s1598_s24 = sshll.u32 %s336_s23, 3 }
  0x1d   : > { %s2086_s27 = scalar_lea.vmem %s2546_s0, %s1598_s24 }
  0x21   : > { %v343_v0 = vld [vmem:[%s2547_s1] sm:$0xff] (!%p1599_p11) }
  0x22   : > { %345 = vst.msk [vmem:[#allocation2] sm:$0xff] %vm344_vm0, %v343_v0 }
  0x23 PF: > { %v348_v1 = vld [vmem:[%s2535_s4] sm:$0xff]  ;;  %v349_v2 = vld [vmem:[%s2535_s4 + $0x8] sm:$0xff]  ;;  %v1966_v4 = vmov 0.0|0.0   ;;  %v350_v7 = vld [vmem:[%s2535_s4 + $0x10] sm:$0xff]  ;;  %vm1967_vm1 = vmmov 0   ;;  %v1968_v12 = vmov 0.0   ;;  %v650_v56 = vlaneseq }
  0x24   : > { %v431_v3 = vld [vmem:[%s2535_s4 + $0x20] sm:$0xff]  ;;  %1706 = vmatprep.subr.bf16.mxu0 %v1966_v4  ;;  %1712 = vmatprep.subr.bf16.mxu1 %v1966_v4  ;;  %v1707_v5 = vpack.c.bf16 %v349_v2, %v348_v1  ;;  %v432_v6 = vld [vmem:[%s2535_s4 + $0x28] sm:$0xff]  ;;  %v351_v8 = vld [vmem:[%s2535_s4 + $0x18] sm:$0xff]  ;;  %vm357_vm2 = vcmask 261120   ;;  %s1970_s26 = smov 96   ;;  %vm760_vm3 = vcmask 392192  }
  0x25   : > { %v1713_v9 = vpack.c.bf16 %v432_v6, %v431_v3  ;;  %v433_v10 = vld [vmem:[%s2535_s4 + $0x30] sm:$0xff]  ;;  %v434_v11 = vld [vmem:[%s2535_s4 + $0x38] sm:$0xff]  ;;  %1655 = vmatprep.mubr.msk.f32.mxu0 %vm1967_vm1, %v1968_v12  ;;  %1666 = vmatprep.mubr.msk.f32.mxu1 %vm1967_vm1, %v1968_v12  ;;  %v1710_v13 = vpack.c.bf16 %v351_v8, %v350_v7  ;;  %v346_v15 = vld [vmem:[%s2086_s27] sm:$0xff]  ;;  %s2541_s27 = smov 64   ;;  %v1972_v54 = vmov 1966171168  }
  0x26   : > { %1708 = vmatpush3.bf16.msra.mxu0 %v1707_v5  ;;  %v1716_v14 = vpack.c.bf16 %v434_v11, %v433_v10  ;;  %v1602_v17 = vld [vmem:[%s2535_s4 + $0x71] ss:$0 sm:$0xff]  ;;  %v1600_v23 = vld [vmem:[%s2535_s4 + $0x70] ss:$0 sm:$0xff]  ;;  %v543_v34 = vld [vmem:[%s2536_s5 + $0x8] sm:$0xff]  ;;  %v648_v55 = vunpack.c.l.s4 %v1972_v54  ;;  %v2177_v58 = vshrl.u32 %v650_v56, 7 }
  0x27   : > { %1714 = vmatpush3.bf16.msra.mxu1 %v1713_v9  ;;  %1709 = vmatprep.subr.bf16.mxu0 %v1966_v4  ;;  %v545_v35 = vld [vmem:[%s2536_s5 + $0x18] sm:$0xff]  ;;  %v542_v36 = vld [vmem:[%s2536_s5] sm:$0xff]  ;;  %v544_v38 = vld [vmem:[%s2536_s5 + $0x10] sm:$0xff]  ;;  %vm827_vm4 = vcmask 1041409   ;;  %vm829_vm5 = vcmask 1042434   ;;  %vm831_vm6 = vcmask 1043459  }
  0x28   : > { %1715 = vmatprep.subr.bf16.mxu1 %v1966_v4  ;;  %v1718_v37 = vpack.c.bf16 %v545_v35, %v543_v34  ;;  %v547_v39 = vld [vmem:[%s2536_s5 + $0x28] sm:$0xff]  ;;  %v549_v40 = vld [vmem:[%s2536_s5 + $0x38] sm:$0xff]  ;;  %v1720_v41 = vpack.c.bf16 %v544_v38, %v542_v36  ;;  %v546_v43 = vld [vmem:[%s2536_s5 + $0x20] sm:$0xff]  ;;  %v649_v57 = vunpack.c.0.s8 %v648_v55  ;;  %v2188_v0 = vsub.s32 0, %v2177_v58  ;;  %s1974_s0 = smov 48   ;;  %s1975_s1 = smov 80  }
  0x29   : > { %v347_v16 = vld [vmem:[#allocation2] sm:$0xff]  ;;  %v1722_v42 = vpack.c.bf16 %v549_v40, %v547_v39  ;;  %v548_v44 = vld [vmem:[%s2536_s5 + $0x30] sm:$0xff]  ;;  %v638_v11 = vld [vmem:[%s2534_s3 + $0x8] sm:$0xff]  ;;  %vm833_vm7 = vcmask 1044484   ;;  %vm835_vm8 = vcmask 1045509   ;;  %vm837_vm9 = vcmask 1046534  }
  0x2a   : > { %1711 = vmatpush3.bf16.msra.mxu0 %v1710_v13  ;;  %v1724_v46 = vpack.c.bf16 %v548_v44, %v546_v43  ;;  %v652_v59 = vsub.s32 %v649_v57, %v2177_v58  ;;  %v637_v5 = vld [vmem:[%s2534_s3] sm:$0xff]  ;;  %v639_v13 = vld [vmem:[%s2534_s3 + $0x10] sm:$0xff]  ;;  %v644_v34 = vld [vmem:[%s2534_s3 + $0x38] sm:$0xff]  ;;  %vm839_vm10 = vcmask 1047559   ;;  %vm842_vm11 = vcmask 64512   ;;  %s1976_s14 = smov 16  }
  0x2b   : > { %1717 = vmatpush3.bf16.msra.mxu1 %v1716_v14  ;;  %1719 = vmatprep.subr.bf16.mxu0 %v1718_v37  ;;  %v641_v14 = vld [vmem:[%s2534_s3 + $0x20] sm:$0xff]  ;;  %v643_v35 = vld [vmem:[%s2534_s3 + $0x30] sm:$0xff]  ;;  %vm1269_vm12 = vcmask 130048   ;;  %s2548_s17 = smov 64   ;;  %s1501_s25 = sshll.u32 %s2090_s29, 4  ;;  %s1502_s25 = int_to_ptr.vmem [resolvable:$true] %s1501_s25 }
  0x2c   : > { %1726 = vmatprep.subr.bf16.mxu1 %v1966_v4  ;;  %v751_v38 = vld [vmem:[%s2536_s5 + $0x40] ss:$0 sm:$0xff]  ;;  %s1870_s22 = scalar_lea.vmem %s1502_s25, 128 }
  0x2d   : > { %1656 = vmatmul.mubr.msk.f32.vlgmr.msra.gmra.mrb[0].mxu0 %vm357_vm2, %v346_v15  ;;  %p1871_p12 = scmp.ne.s32.totalorder %s1502_s25, %s1870_s22 }
  0x2e   : > { %1667 = vmatmul.mubr.msk.f32.vlgmr.msra.gmra.mrb[0].mxu1 %vm357_vm2, %v347_v16  ;;  %619 = vmatprep.mubr.f32.mxu0 %v1968_v12 }
  0x2f   : > { %1681 = vmatprep.mubr.msk.f32.mxu1 %vm1967_vm1, %v1968_v12  ;;  %1721 = vmatpush1.bf16.msra.mxu0 %v1720_v41  ;;  %p1872_p13 = pnand %p1871_p12, %p2067_p5 }
  0x30   : > { %1723 = vmatprep.subr.bf16.mxu0 %v1722_v42 }
  0x31   : > { %p1873_p0 = pneg %p1872_p13 }
  0x33   : > { %1725 = vmatpush1.bf16.msra.mxu0 %v1724_v46 }
  0x34   : > { %1735 = vmatprep.subr.bf16.mxu0 %v1966_v4 }
 0x100   : > { %v427_v18 = vpop.f32.mrb[0].mxu0 }
 0x101   : > { %v509_v19 = vpop.f32.mrb[0].mxu1  ;;  %v1657_v20 = vpop.f32.mrb[1].mxu0  ;;  %v428_v24 = vadd.f32 %v1600_v23, %v427_v18  ;;  %v640_v18 = vld [vmem:[%s2534_s3 + $0x18] sm:$0xff]  ;;  %v642_v23 = vld [vmem:[%s2534_s3 + $0x28] sm:$0xff] }
 0x102   : > { %v510_v21 = vadd.f32 %v1602_v17, %v509_v19  ;;  %v1668_v22 = vpop.f32.mrb[1].mxu1 }
 0x104   : > { %521 = vrot.lane.b32.xlu0 %v510_v21, %s2541_s27  ;;  %v513_v25 = vadd.f32 %v510_v21, %v428_v24 }
 0x106   : > { %v1604_v26 = vmul.f32 -1.442695, %v513_v25 }
 0x108   : > { %1804 = vpow2.f32 %v1604_v26 }
 0x112   : > { %v1805_v27 = vpop.eup %1804 }
 0x113   : > { %v517_v28 = vadd.f32 1.0, %v1805_v27 }
 0x115   : > { %1806 = vrcp.f32 %v517_v28 }
 0x11f   : > { %v1807_v29 = vpop.eup %1806 }
 0x120   : > { %v531_v48 = vsub.f32 1.0, %v1807_v29 }
 0x176   : > { %v522_v30 = vpop.permute.xlu0 %521 }
 0x177   : > { %v524_v31 = vmul.f32 %v1807_v29, %v522_v30 }
 0x179   : > { %526 = vrot.lane.b32.xlu0 %v524_v31, %s2541_s27  ;;  %s1971_s27 = smov 32  }
 0x1eb   : > { %v527_v32 = vpop.permute.xlu0 %526 }
 0x1ec   : > { %v529_v33 = vadd.f32 %v527_v32, %v428_v24 }
 0x1ee   : > { %1808 = vtanh.f32 %v529_v33 }
 0x1f8   : > { %v1809_v45 = vpop.eup %1808 }
 0x1f9   : > { %533 = vrot.lane.b32.xlu1 %v1809_v45, %s1970_s26 }
 0x1fd   : > { %537 = vrot.lane.b32.xlu1 %v347_v16, %s1971_s27  ;;  %s1977_s27 = smov [#allocation5]  }
 0x26b   : > { %v534_v47 = vpop.permute.xlu1 %533 }
 0x26c   : > { %v536_v50 = vmul.f32 %v534_v47, %v531_v48 }
 0x26f   : > { %v538_v49 = vpop.permute.xlu1 %537 }
 0x270   : > { %v540_v51 = vmul.f32 %v1807_v29, %v538_v49 }
 0x272   : > { %v2169_v52 = vadd.f32 %v540_v51, %v536_v50 }
 0x274   : > { %551 = vrot.lane.b32.xlu0 %v2169_v52, %s1970_s26 }
 0x2e6   : > { %v552_v53 = vpop.permute.xlu0 %551 }
 0x2e7   : > { %1605 = vmatmul.mubr.msk.f32.vlgmr.msra.gmra.mrb[2].mxu0 %vm357_vm2, %v552_v53 }
 0x2e8   : > { %1692 = vmatprep.mubr.msk.f32.mxu0 %vm1967_vm1, %v1968_v12 }
 0x3ba   : > { %v2180_v60 = vpop.f32.mrb[2].mxu0 }
 0x3bb   : > { %v646_v61 = vcombine.high %v2180_v60, %v2180_v60  ;;  %v653_v62 = vrot.slane %v2180_v60, %v652_v59  ;;  %v2185_v63 = vpop.f32.mrb[3].mxu0 }
 0x3bd   : > { %v660_v1 = vrot.slane %v646_v61, %v652_v59  ;;  %v661_v2 = vcombine.high %v653_v62, %v653_v62  ;;  %v669_v3 = vrot.slane %v653_v62, %v652_v59 }
 0x3bf   : > { %v662_v6 = vcombine.high %v660_v1, %v660_v1  ;;  %v676_v7 = vrot.slane %v660_v1, %v652_v59  ;;  %v683_v8 = vrot.slane %v661_v2, %v652_v59  ;;  %v691_v9 = vcombine.high %v669_v3, %v669_v3 }
 0x3c0   : > { %v698_v10 = vrot.slane %v669_v3, %v2188_v0 }
 0x3c1   : > { %v690_v15 = vrot.slane %v662_v6, %v652_v59  ;;  %v693_v16 = vcombine.high %v683_v8, %v683_v8  ;;  %v702_v17 = vrot.slane %v683_v8, %v2188_v0  ;;  %v692_v19 = vcombine.high %v676_v7, %v676_v7 }
 0x3c2   : > { %v706_v20 = vrot.slane %v691_v9, %v2188_v0  ;;  %v714_v21 = vrot.slane %v676_v7, %v2188_v0  ;;  %v735_v22 = vadd.f32 %v698_v10, %v637_v5  ;;  %v794_v6 = vand.u32 127, %v650_v56 }
 0x3c3   : > { %v694_v24 = vcombine.high %v690_v15, %v690_v15  ;;  %v710_v25 = vrot.slane %v693_v16, %v2188_v0  ;;  %v718_v26 = vrot.slane %v690_v15, %v2188_v0  ;;  %v736_v27 = vadd.f32 %v702_v17, %v638_v11 }
 0x3c4   : > { %v737_v28 = vadd.f32 %v706_v20, %v639_v13  ;;  %v739_v29 = vadd.f32 %v714_v21, %v641_v14  ;;  %1810 = vtanh.f32 %v735_v22  ;;  %v722_v32 = vrot.slane %v692_v19, %v2188_v0 }
 0x3c5   : > { %v726_v30 = vrot.slane %v694_v24, %v2188_v0  ;;  %v738_v31 = vadd.f32 %v710_v25, %v640_v18  ;;  %v740_v33 = vadd.f32 %v718_v26, %v642_v23  ;;  %1812 = vtanh.f32 %v736_v27 }
 0x3c6   : > { %1814 = vtanh.f32 %v737_v28  ;;  %v741_v37 = vadd.f32 %v722_v32, %v643_v35  ;;  %v2235_v8 = vsub.s32 %v794_v6, %v2177_v58  ;;  %v1973_v32 = vmov 0  }
 0x3c7   : > { %1816 = vtanh.f32 %v739_v29  ;;  %v742_v36 = vadd.f32 %v726_v30, %v644_v34  ;;  %1803 = vset.pattern.permute.xlu0 %v1973_v32  ;;  %1802 = vset.pattern.permute.xlu1 %v1973_v32  ;;  %v857_v34 = vsub.s32 2, %v2177_v58  ;;  %v861_v35 = vsub.s32 3, %v2177_v58 }
 0x3c8   : > { %1818 = vtanh.f32 %v738_v31 }
 0x3c9   : > { %1820 = vtanh.f32 %v740_v33  ;;  %v853_v33 = vsub.s32 1, %v2177_v58 }
 0x3ca   : > { %1822 = vtanh.f32 %v742_v36 }
 0x3cb   : > { %1824 = vtanh.f32 %v741_v37 }
 0x3ce   : > { %v1811_v39 = vpop.eup %1810 }
 0x3cf   : > { %v752_v40 = vmul.f32 %v1811_v39, %v751_v38  ;;  %v1813_v41 = vpop.eup %1812 }
 0x3d0   : > { %v1815_v42 = vpop.eup %1814  ;;  %v753_v44 = vmul.f32 %v1813_v41, %v751_v38 }
 0x3d1   : > { %v761_v43 = vsel %vm760_vm3, %v752_v40, 0.0  ;;  %v1817_v45 = vpop.eup %1816  ;;  %v754_v48 = vmul.f32 %v1815_v42, %v751_v38  ;;  %v865_v40 = vsub.s32 4, %v2177_v58 }
 0x3d2   : > { %762 = vadd.xlane.f32.xlu1 %v761_v43  ;;  %v1819_v46 = vpop.eup %1818  ;;  %v764_v47 = vsel %vm760_vm3, %v753_v44, 0.0  ;;  %v756_v57 = vmul.f32 %v1817_v45, %v751_v38 }
 0x3d3   : > { %v1821_v49 = vpop.eup %1820  ;;  %765 = vadd.xlane.f32.xlu0 %v764_v47  ;;  %v755_v50 = vmul.f32 %v1819_v46, %v751_v38  ;;  %v767_v55 = vsel %vm760_vm3, %v754_v48, 0.0  ;;  %v869_v47 = vsub.s32 5, %v2177_v58 }
 0x3d4   : > { %v757_v53 = vmul.f32 %v1821_v49, %v751_v38  ;;  %v1823_v54 = vpop.eup %1822  ;;  %v773_v1 = vsel %vm760_vm3, %v756_v57, 0.0  ;;  %v877_v57 = vsub.s32 7, %v2177_v58 }
 0x3d5   : > { %v770_v51 = vsel %vm760_vm3, %v755_v50, 0.0  ;;  %v1825_v59 = vpop.eup %1824  ;;  %v759_v62 = vmul.f32 %v1823_v54, %v751_v38 }
 0x3d6   : > { %771 = vadd.xlane.f32.xlu1 %v770_v51  ;;  %v776_v61 = vsel %vm760_vm3, %v757_v53, 0.0  ;;  %v758_v2 = vmul.f32 %v1825_v59, %v751_v38  ;;  %v873_v51 = vsub.s32 6, %v2177_v58 }
 0x3d7   : > { %768 = vadd.xlane.f32.xlu0 %v767_v55  ;;  %v782_v3 = vsel %vm760_vm3, %v759_v62, 0.0 }
 0x3d8   : > { %v779_v5 = vsel %vm760_vm3, %v758_v2, 0.0 }
 0x3da   : > { %777 = vadd.xlane.f32.xlu1 %v776_v61 }
 0x3db   : > { %774 = vadd.xlane.f32.xlu0 %v773_v1 }
 0x3de   : > { %783 = vadd.xlane.f32.xlu1 %v782_v3 }
 0x3df   : > { %780 = vadd.xlane.f32.xlu0 %v779_v5 }
 0x45f   : > { %v763_v7 = vpop.xlane.xlu1 %762 }
 0x460   : > { %v766_v9 = vpop.xlane.xlu0 %765  ;;  %v798_v13 = vrot.slane %v763_v7, %v2235_v8 }
 0x461   : > { %v802_v10 = vrot.slane %v766_v9, %v2235_v8 }
 0x463   : > { %v772_v11 = vpop.xlane.xlu1 %771  ;;  %v828_v16 = vsel %vm827_vm4, %v802_v10, %v798_v13 }
 0x464   : > { %v769_v14 = vpop.xlane.xlu0 %768  ;;  %v810_v18 = vrot.slane %v772_v11, %v2235_v8 }
 0x465   : > { %v806_v15 = vrot.slane %v769_v14, %v2235_v8 }
 0x467   : > { %v830_v17 = vsel %vm829_vm5, %v806_v15, %v828_v16  ;;  %v778_v56 = vpop.xlane.xlu1 %777 }
 0x468   : > { %v775_v19 = vpop.xlane.xlu0 %774  ;;  %v832_v21 = vsel %vm831_vm6, %v810_v18, %v830_v17  ;;  %v818_v24 = vrot.slane %v778_v56, %v2235_v8 }
 0x469   : > { %v814_v20 = vrot.slane %v775_v19, %v2235_v8 }
 0x46b   : > { %v834_v22 = vsel %vm833_vm7, %v814_v20, %v832_v21  ;;  %v2246_v23 = vpop.xlane.xlu1 %783 }
 0x46c   : > { %v781_v25 = vpop.xlane.xlu0 %780  ;;  %v826_v27 = vrot.slane %v2246_v23, %v2235_v8  ;;  %v836_v28 = vsel %vm835_vm8, %v818_v24, %v834_v22 }
 0x46d   : > { %v822_v26 = vrot.slane %v781_v25, %v2235_v8 }
 0x46f   : > { %v838_v29 = vsel %vm837_vm9, %v822_v26, %v836_v28 }
 0x470   : > { %v840_v30 = vsel %vm839_vm10, %v826_v27, %v838_v29 }
 0x471   : > { %v843_v31 = vsel %vm842_vm11, %v840_v30, -inf }
 0x472   : > { %844 = vmax.xlane.f32.xlu0 %v843_v31 }
 0x4ff   : > { %v845_v36 = vpop.xlane.xlu0 %844 }
 0x500   : > { %v850_v37 = vrot.slane %v845_v36, %v2188_v0  ;;  %v854_v38 = vrot.slane %v845_v36, %v853_v33  ;;  %v858_v39 = vrot.slane %v845_v36, %v857_v34  ;;  %v862_v41 = vrot.slane %v845_v36, %v861_v35 }
 0x501   : > { %v866_v48 = vrot.slane %v845_v36, %v865_v40  ;;  %v870_v53 = vrot.slane %v845_v36, %v869_v47  ;;  %v874_v59 = vrot.slane %v845_v36, %v873_v51  ;;  %v878_v3 = vrot.slane %v845_v36, %v877_v57 }
 0x502   : > { %v887_v42 = vsub.f32 %v763_v7, %v850_v37  ;;  %v888_v43 = vsub.f32 %v766_v9, %v854_v38  ;;  %v889_v44 = vsub.f32 %v769_v14, %v858_v39  ;;  %v890_v49 = vsub.f32 %v772_v11, %v862_v41 }
 0x503   : > { %v891_v54 = vsub.f32 %v775_v19, %v866_v48  ;;  %v892_v61 = vsub.f32 %v778_v56, %v870_v53  ;;  %v893_v5 = vsub.f32 %v781_v25, %v874_v59  ;;  %v894_v9 = vsub.f32 %v2246_v23, %v878_v3 }
 0x504   : > { %v895_v45 = vmul.f32 1.442695, %v887_v42  ;;  %v897_v46 = vmul.f32 1.442695, %v888_v43  ;;  %v899_v50 = vmul.f32 1.442695, %v889_v44 }
 0x505   : > { %v901_v55 = vmul.f32 1.442695, %v890_v49  ;;  %v903_v62 = vmul.f32 1.442695, %v891_v54  ;;  %v905_v6 = vmul.f32 1.442695, %v892_v61 }
 0x506   : > { %1826 = vpow2.f32 %v895_v45  ;;  %v907_v10 = vmul.f32 1.442695, %v893_v5  ;;  %v909_v13 = vmul.f32 1.442695, %v894_v9  ;;  %v1606_v45 = vld [vmem:[%s2535_s4 + $0x73] ss:$0 sm:$0xff] }
 0x507   : > { %1828 = vpow2.f32 %v897_v46 }
 0x508   : > { %1830 = vpow2.f32 %v899_v50 }
 0x509   : > { %1832 = vpow2.f32 %v901_v55 }
 0x50a   : > { %1834 = vpow2.f32 %v903_v62 }
 0x50b   : > { %1836 = vpow2.f32 %v905_v6 }
 0x50c   : > { %1838 = vpow2.f32 %v907_v10  ;;  %v1155_v10 = vld [vmem:[%s2535_s4 + $0x40] sm:$0xff] }
 0x50d   : > { %1840 = vpow2.f32 %v909_v13 }
 0x510   : > { %v2276_v1 = vpop.eup %1826 }
 0x511   : > { %v2278_v2 = vpop.eup %1828  ;;  %920 = vperm.xlu1 %1802, %v2276_v1  }
 0x512   : > { %923 = vperm.xlu0 %1803, %v2278_v2   ;;  %v2284_v7 = vpop.eup %1830 }
 0x513   : > { %v2288_v11 = vpop.eup %1832 }
 0x514   : > { %v2291_v14 = vpop.eup %1834 }
 0x515   : > { %926 = vperm.xlu1 %1802, %v2284_v7   ;;  %v2294_v15 = vpop.eup %1836 }
 0x516   : > { %v2297_v16 = vpop.eup %1838 }
 0x517   : > { %v2300_v17 = vpop.eup %1840 }
 0x519   : > { %929 = vperm.xlu1 %1802, %v2288_v11  }
 0x51d   : > { %932 = vperm.xlu1 %1802, %v2291_v14  }
 0x521   : > { %935 = vperm.xlu1 %1802, %v2294_v15  }
 0x525   : > { %938 = vperm.xlu1 %1802, %v2297_v16  }
 0x529   : > { %941 = vperm.xlu1 %1802, %v2300_v17  }
 0x590   : > { %v921_v56 = vpop.permute.xlu1 %920 }
 0x591   : > { %v924_v21 = vpop.permute.xlu0 %923  ;;  %v946_v24 = vrot.slane %v921_v56, %v2235_v8 }
 0x592   : > { %v950_v23 = vrot.slane %v924_v21, %v2235_v8  ;;  %v1043_v21 = vld [vmem:[%s2533_s2] sm:$0xff] }
 0x594   : > { %v927_v18 = vpop.permute.xlu1 %926  ;;  %v975_v29 = vsel %vm827_vm4, %v950_v23, %v946_v24 }
 0x595   : > { %v954_v25 = vrot.slane %v927_v18, %v2235_v8 }
 0x597   : > { %v976_v31 = vsel %vm829_vm5, %v954_v25, %v975_v29 }
 0x598   : > { %v930_v19 = vpop.permute.xlu1 %929 }
 0x599   : > { %v958_v26 = vrot.slane %v930_v19, %v2235_v8  ;;  %v1044_v19 = vld [vmem:[%s2533_s2 + $0x8] sm:$0xff] }
 0x59b   : > { %v977_v36 = vsel %vm831_vm6, %v958_v26, %v976_v31 }
 0x59c   : > { %v933_v20 = vpop.permute.xlu1 %932 }
 0x59d   : > { %v962_v27 = vrot.slane %v933_v20, %v2235_v8 }
 0x59f   : > { %v978_v37 = vsel %vm833_vm7, %v962_v27, %v977_v36  ;;  %v1046_v27 = vld [vmem:[%s2533_s2 + $0x18] sm:$0xff] }
 0x5a0   : > { %v936_v22 = vpop.permute.xlu1 %935 }
 0x5a1   : > { %v966_v30 = vrot.slane %v936_v22, %v2235_v8  ;;  %v1045_v22 = vld [vmem:[%s2533_s2 + $0x10] sm:$0xff] }
 0x5a3   : > { %v979_v39 = vsel %vm835_vm8, %v966_v30, %v978_v37  ;;  %v1047_v37 = vld [vmem:[%s2533_s2 + $0x20] sm:$0xff] }
 0x5a4   : > { %v939_v28 = vpop.permute.xlu1 %938 }
 0x5a5   : > { %v970_v32 = vrot.slane %v939_v28, %v2235_v8 }
 0x5a7   : > { %v980_v42 = vsel %vm837_vm9, %v970_v32, %v979_v39 }
 0x5a8   : > { %v942_v38 = vpop.permute.xlu1 %941 }
 0x5a9   : > { %v974_v41 = vrot.slane %v942_v38, %v2235_v8 }
 0x5ab   : > { %v981_v43 = vsel %vm839_vm10, %v974_v41, %v980_v42 }
 0x5ac   : > { %v983_v44 = vsel %vm842_vm11, %v981_v43, 0.0 }
 0x5ad   : > { %984 = vadd.xlane.f32.xlu1 %v983_v44 }
 0x5be   : > { %632 = vrot.lane.b32.xlu1 %v1606_v45, %s1974_s0  ;;  %s1874_s0 = sshll.u32 %s1977_s27, 4  ;;  %s1875_s0 = int_to_ptr.vmem [resolvable:$false] %s1874_s0 }
 0x5bf   : > { %p1877_p1 = scmp.lt.s32.totalorder %s1502_s25, %s1875_s0 }
 0x63a   : > { %v985_v46 = vpop.xlane.xlu1 %984 }
 0x63b   : > { %v990_v48 = vrot.slane %v985_v46, %v2188_v0  ;;  %v994_v49 = vrot.slane %v985_v46, %v853_v33  ;;  %v998_v8 = vrot.slane %v985_v46, %v857_v34  ;;  %v1002_v50 = vrot.slane %v985_v46, %v861_v35 }
 0x63c   : > { %v1006_v54 = vrot.slane %v985_v46, %v865_v40  ;;  %v1010_v33 = vrot.slane %v985_v46, %v869_v47  ;;  %v1014_v35 = vrot.slane %v985_v46, %v873_v51  ;;  %v1018_v40 = vrot.slane %v985_v46, %v877_v57  ;;  %v1048_v46 = vld [vmem:[%s2533_s2 + $0x28] sm:$0xff] }
 0x63d   : > { %1842 = vrcp.f32 %v990_v48 }
 0x63e   : > { %1844 = vrcp.f32 %v994_v49  ;;  %v633_v57 = vpop.permute.xlu1 %632 }
 0x63f   : > { %1846 = vrcp.f32 %v998_v8  ;;  %v635_v9 = vadd.f32 %v633_v57, %v2180_v60  ;;  %v636_v13 = vadd.f32 %v633_v57, %v2185_v63  ;;  %v1157_v60 = vld [vmem:[%s2535_s4 + $0x50] sm:$0xff]  ;;  %v1160_v63 = vld [vmem:[%s2535_s4 + $0x68] sm:$0xff] }
 0x640   : > { %1848 = vrcp.f32 %v1002_v50 }
 0x641   : > { %1850 = vrcp.f32 %v1006_v54 }
 0x642   : > { %1852 = vrcp.f32 %v1010_v33 }
 0x643   : > { %1854 = vrcp.f32 %v1014_v35 }
 0x644   : > { %1856 = vrcp.f32 %v1018_v40 }
 0x647   : > { %v1843_v53 = vpop.eup %1842 }
 0x648   : > { %v1028_v55 = vmul.f32 %v1843_v53, %v2276_v1  ;;  %v1845_v0 = vpop.eup %1844 }
 0x649   : > { %v1030_v59 = vmul.f32 %v1845_v0, %v2278_v2  ;;  %v1847_v34 = vpop.eup %1846 }
 0x64a   : > { %1053 = vperm.xlu0 %1803, %v1028_v55   ;;  %v1032_v61 = vmul.f32 %v1847_v34, %v2284_v7  ;;  %v1849_v62 = vpop.eup %1848 }
 0x64b   : > { %v1034_v1 = vmul.f32 %v1849_v62, %v2288_v11  ;;  %v1851_v3 = vpop.eup %1850  ;;  %v1156_v11 = vld [vmem:[%s2535_s4 + $0x48] sm:$0xff] }
 0x64c   : > { %v1036_v47 = vmul.f32 %v1851_v3, %v2291_v14  ;;  %v1853_v2 = vpop.eup %1852  ;;  %v1727_v14 = vpack.c.bf16 %v1156_v11, %v1155_v10 }
 0x64d   : > { %v1038_v5 = vmul.f32 %v1853_v2, %v2294_v15  ;;  %v1855_v51 = vpop.eup %1854  ;;  %v1158_v15 = vld [vmem:[%s2535_s4 + $0x58] sm:$0xff] }
 0x64e   : > { %1058 = vperm.xlu0 %1803, %v1030_v59   ;;  %v1040_v6 = vmul.f32 %v1855_v51, %v2297_v16  ;;  %v1857_v7 = vpop.eup %1856  ;;  %1728 = vmatpush3.bf16.msra.mxu1 %v1727_v14  ;;  %v1159_v16 = vld [vmem:[%s2535_s4 + $0x60] sm:$0xff]  ;;  %v1049_v59 = vld [vmem:[%s2533_s2 + $0x30] sm:$0xff]  ;;  %v1050_v51 = vld [vmem:[%s2533_s2 + $0x38] sm:$0xff] }
 0x64f   : > { %v1042_v58 = vmul.f32 %v1857_v7, %v2300_v17  ;;  %1729 = vmatprep.subr.bf16.mxu1 %v1966_v4  ;;  %v1730_v17 = vpack.c.bf16 %v1158_v15, %v1157_v60  ;;  %v1733_v56 = vpack.c.bf16 %v1160_v63, %v1159_v16 }
 0x652   : > { %1063 = vperm.xlu0 %1803, %v1032_v61   ;;  %1731 = vmatpush3.bf16.msra.mxu1 %v1730_v17 }
 0x653   : > { %1732 = vmatprep.subr.bf16.mxu1 %v1966_v4 }
 0x656   : > { %1068 = vperm.xlu0 %1803, %v1034_v1   ;;  %1734 = vmatpush3.bf16.msra.mxu1 %v1733_v56 }
 0x657   : > { %1741 = vmatprep.subr.bf16.mxu1 %v1966_v4 }
 0x65a   : > { %1073 = vperm.xlu0 %1803, %v1036_v47  }
 0x65e   : > { %1078 = vperm.xlu0 %1803, %v1038_v5  }
 0x662   : > { %1083 = vperm.xlu0 %1803, %v1040_v6  }
 0x666   : > { %1088 = vperm.xlu0 %1803, %v1042_v58  }
 0x66a   : > { %1254 = vrot.lane.b32.xlu0 %v635_v9, %s1975_s1  ;;  %s1876_s1 = scalar_lea.vmem %s1875_s0, 256 }
 0x66b   : > { %p1878_p2 = scmp.lt.s32.totalorder %s1876_s1, %s1870_s22 }
 0x66d   : > { %p1879_p3 = por %p1878_p2, %p1877_p1 }
 0x66e   : > { %1265 = vrot.lane.b32.xlu0 %v635_v9, %s1976_s14 }
 0x66f   : > { %p1880_p4 = pnand %p1879_p3, %p1873_p0 }
 0x672   : > { %1267 = vrot.lane.b32.xlu0 %v636_v13, %s1976_s14 }
 0x6c9   : > { %v1054_v18 = vpop.permute.xlu0 %1053 }
 0x6ca   : > { %v1091_v25 = vmul.f32 %v1054_v18, %v1043_v21 }
 0x6cc   : > { %v1099_v31 = vsel %vm760_vm3, %v1091_v25, 0.0 }
 0x6cd   : > { %v1059_v20 = vpop.permute.xlu0 %1058  ;;  %v1100_v41 = vrot.slane %v1099_v31, 4 }
 0x6ce   : > { %v1092_v23 = vmul.f32 %v1059_v20, %v1044_v19 }
 0x6cf   : > { %v1101_v8 = vadd.f32 %v1100_v41, %v1099_v31 }
 0x6d0   : > { %v1106_v28 = vsel %vm760_vm3, %v1092_v23, 0.0 }
 0x6d1   : > { %v1064_v24 = vpop.permute.xlu0 %1063  ;;  %v1107_v36 = vrot.slane %v1106_v28, 4  ;;  %v1102_v61 = vrot.slane %v1101_v8, 2 }
 0x6d2   : > { %v1093_v26 = vmul.f32 %v1064_v24, %v1045_v22 }
 0x6d3   : > { %v1108_v45 = vadd.f32 %v1107_v36, %v1106_v28  ;;  %v1103_v58 = vadd.f32 %v1102_v61, %v1101_v8 }
 0x6d4   : > { %v1113_v29 = vsel %vm760_vm3, %v1093_v26, 0.0 }
 0x6d5   : > { %v1069_v30 = vpop.permute.xlu0 %1068  ;;  %v1114_v38 = vrot.slane %v1113_v29, 4  ;;  %v1109_v0 = vrot.slane %v1108_v45, 2  ;;  %v1104_v56 = vrot.slane %v1103_v58, 1 }
 0x6d6   : > { %v1094_v32 = vmul.f32 %v1069_v30, %v1046_v27 }
 0x6d7   : > { %v1115_v48 = vadd.f32 %v1114_v38, %v1113_v29  ;;  %v1110_v2 = vadd.f32 %v1109_v0, %v1108_v45  ;;  %v1105_v27 = vadd.f32 %v1104_v56, %v1103_v58 }
 0x6d8   : > { %v1120_v39 = vsel %vm760_vm3, %v1094_v32, 0.0 }
 0x6d9   : > { %v1121_v42 = vrot.slane %v1120_v39, 4  ;;  %v1074_v43 = vpop.permute.xlu0 %1073  ;;  %v1116_v34 = vrot.slane %v1115_v48, 2  ;;  %v1111_v60 = vrot.slane %v1110_v2, 1 }
 0x6da   : > { %v1095_v44 = vmul.f32 %v1074_v43, %v1047_v37 }
 0x6db   : > { %v1122_v50 = vadd.f32 %v1121_v42, %v1120_v39  ;;  %v1117_v6 = vadd.f32 %v1116_v34, %v1115_v48  ;;  %v1112_v22 = vadd.f32 %v1111_v60, %v1110_v2  ;;  %v1295_v2 = vld [vmem:[%s2537_s6 + $0x10] sm:$0xff]  ;;  %v1376_v60 = vld [vmem:[%s2538_s7 + $0x8] sm:$0xff] }
 0x6dc   : > { %v1127_v49 = vsel %vm760_vm3, %v1095_v44, 0.0 }
 0x6dd   : > { %v1128_v53 = vrot.slane %v1127_v49, 4  ;;  %v1079_v54 = vpop.permute.xlu0 %1078  ;;  %v1123_v62 = vrot.slane %v1122_v50, 2  ;;  %v1118_v17 = vrot.slane %v1117_v6, 1  ;;  %v1174_v32 = vsel %vm827_vm4, %v1112_v22, %v1105_v27 }
 0x6de   : > { %v1096_v55 = vmul.f32 %v1079_v54, %v1048_v46 }
 0x6df   : > { %v1129_v33 = vadd.f32 %v1128_v53, %v1127_v49  ;;  %v1124_v57 = vadd.f32 %v1123_v62, %v1122_v50  ;;  %v1119_v26 = vadd.f32 %v1118_v17, %v1117_v6  ;;  %v1607_v49 = vld [vmem:[%s2535_s4 + $0x72] ss:$0 sm:$0xff] }
 0x6e0   : > { %v1134_v35 = vsel %vm760_vm3, %v1096_v55, 0.0 }
 0x6e1   : > { %v1135_v40 = vrot.slane %v1134_v35, 4  ;;  %v1084_v1 = vpop.permute.xlu0 %1083  ;;  %v1130_v3 = vrot.slane %v1129_v33, 2  ;;  %v1125_v18 = vrot.slane %v1124_v57, 1  ;;  %v1175_v38 = vsel %vm829_vm5, %v1119_v26, %v1174_v32 }
 0x6e2   : > { %v1097_v47 = vmul.f32 %v1084_v1, %v1049_v59 }
 0x6e3   : > { %v1136_v5 = vadd.f32 %v1135_v40, %v1134_v35  ;;  %v1131_v13 = vadd.f32 %v1130_v3, %v1129_v33  ;;  %v1126_v28 = vadd.f32 %v1125_v18, %v1124_v57  ;;  %v1293_v3 = vld [vmem:[%s2537_s6] sm:$0xff] }
 0x6e4   : > { %v1141_v7 = vsel %vm760_vm3, %v1097_v47, 0.0  ;;  %v1294_v47 = vld [vmem:[%s2537_s6 + $0x8] sm:$0xff] }
 0x6e5   : > { %v1137_v9 = vrot.slane %v1136_v5, 2  ;;  %v1142_v10 = vrot.slane %v1141_v7, 4  ;;  %v1089_v11 = vpop.permute.xlu0 %1088  ;;  %v1132_v21 = vrot.slane %v1131_v13, 1  ;;  %v1176_v41 = vsel %vm831_vm6, %v1126_v28, %v1175_v38 }
 0x6e6   : > { %v1098_v14 = vmul.f32 %v1089_v11, %v1050_v51  ;;  %v1296_v51 = vld [vmem:[%s2537_s6 + $0x18] sm:$0xff] }
 0x6e7   : > { %v1138_v15 = vadd.f32 %v1137_v9, %v1136_v5  ;;  %v1143_v16 = vadd.f32 %v1142_v10, %v1141_v7  ;;  %v1133_v31 = vadd.f32 %v1132_v21, %v1131_v13  ;;  %v1736_v5 = vpack.c.bf16 %v1294_v47, %v1293_v3 }
 0x6e8   : > { %v1148_v63 = vsel %vm760_vm3, %v1098_v14, 0.0  ;;  %v1739_v6 = vpack.c.bf16 %v1296_v51, %v1295_v2  ;;  %v1375_v14 = vld [vmem:[%s2538_s7] sm:$0xff] }
 0x6e9   : > { %v1144_v19 = vrot.slane %v1143_v16, 2  ;;  %v1149_v20 = vrot.slane %v1148_v63, 4  ;;  %v1139_v23 = vrot.slane %v1138_v15, 1  ;;  %v1177_v43 = vsel %vm833_vm7, %v1133_v31, %v1176_v41  ;;  %v1255_v54 = vpop.permute.xlu0 %1254  ;;  %1737 = vmatpush3.bf16.msra.mxu0 %v1736_v5 }
 0x6ea   : > { %1738 = vmatprep.subr.bf16.mxu0 %v1966_v4 }
 0x6eb   : > { %v1145_v24 = vadd.f32 %v1144_v19, %v1143_v16  ;;  %v1150_v25 = vadd.f32 %v1149_v20, %v1148_v63  ;;  %v1140_v36 = vadd.f32 %v1139_v23, %v1138_v15  ;;  %v1742_v15 = vpack.c.bf16 %v1376_v60, %v1375_v14  ;;  %v1378_v16 = vld [vmem:[%s2538_s7 + $0x18] sm:$0xff]  ;;  %v1610_v63 = vld [vmem:[%s2537_s6 + $0x20] ss:$0 sm:$0xff] }
 0x6ed   : > { %v1146_v29 = vrot.slane %v1145_v24, 1  ;;  %v1151_v30 = vrot.slane %v1150_v25, 2  ;;  %v1178_v45 = vsel %vm835_vm8, %v1140_v36, %v1177_v43  ;;  %v1266_v34 = vpop.permute.xlu0 %1265  ;;  %1740 = vmatpush3.bf16.msra.mxu0 %v1739_v6 }
 0x6ef   : > { %v1152_v37 = vadd.f32 %v1151_v30, %v1150_v25  ;;  %v1147_v39 = vadd.f32 %v1146_v29, %v1145_v24 }
 0x6f1   : > { %v1153_v42 = vrot.slane %v1152_v37, 1  ;;  %v1179_v46 = vsel %vm837_vm9, %v1147_v39, %v1178_v45  ;;  %v1268_v35 = vpop.permute.xlu0 %1267 }
 0x6f2   : > { %v1270_v62 = vsel %vm1269_vm12, %v1266_v34, %v1268_v35 }
 0x6f3   : > { %v1154_v44 = vadd.f32 %v1153_v42, %v1152_v37 }
 0x6f5   : > { %v1180_v48 = vsel %vm839_vm10, %v1154_v44, %v1179_v46 }
 0x6f6   : > { %1682 = vmatmul.mubr.msk.f32.vlgmr.msra.gmra.mrb[2].mxu1 %vm760_vm3, %v1180_v48 }
 0x6f7   : > { %1703 = vmatprep.mubr.msk.f32.mxu1 %vm1967_vm1, %v1968_v12  ;;  %1743 = vmatpush3.bf16.msra.mxu1 %v1742_v15 }
 0x6f8   : > { %1744 = vmatprep.subr.bf16.mxu1 %v1966_v4  ;;  %v1612_v4 = vld [vmem:[%s2538_s7 + $0x20] ss:$0 sm:$0xff] }
 0x7c9   : > { %v1249_v8 = vpop.f32.mrb[2].mxu1 }
 0x7ca   : > { %v1250_v50 = vadd.f32 %v1607_v49, %v1249_v8  ;;  %v1683_v53 = vpop.f32.mrb[3].mxu1 }
 0x7cc   : > { %v1257_v55 = vadd.f32 %v1255_v54, %v1250_v50 }
 0x7ce   : > { %v1609_v0 = vmul.f32 -1.442695, %v1257_v55 }
 0x7d0   : > { %1858 = vpow2.f32 %v1609_v0 }
 0x7da   : > { %v1859_v33 = vpop.eup %1858 }
 0x7db   : > { %v1261_v59 = vadd.f32 1.0, %v1859_v33 }
 0x7dd   : > { %1860 = vrcp.f32 %v1261_v59 }
 0x7e7   : > { %v1861_v61 = vpop.eup %1860 }
 0x7e8   : > { %v1272_v12 = vmul.f32 %v1861_v61, %v1270_v62  ;;  %v1279_v58 = vsub.f32 1.0, %v1861_v61  ;;  %v1285_v9 = vmul.f32 %v1861_v61, %v2169_v52  ;;  %v1377_v52 = vld [vmem:[%s2538_s7 + $0x10] sm:$0xff] }
 0x7e9   : > { %v1745_v17 = vpack.c.bf16 %v1378_v16, %v1377_v52 }
 0x7ea   : > { %1274 = vrot.lane.b32.xlu0 %v1272_v12, %s2548_s17  ;;  %s1616_s17 = sshll.u32 %s2050_s13, 7 }
 0x7eb   : > { %1746 = vmatpush3.bf16.msra.mxu1 %v1745_v17  ;;  %s2460_s24 = scalar_lea.hbm %s2540_s9, %s1616_s17 }
 0x85c   : > { %v1275_v40 = vpop.permute.xlu0 %1274 }
 0x85d   : > { %v1277_v1 = vadd.f32 %v1275_v40, %v1250_v50 }
 0x85f   : > { %1862 = vtanh.f32 %v1277_v1 }
 0x869   : > { %v1863_v7 = vpop.eup %1862 }
 0x86a   : > { %1281 = vrot.lane.b32.xlu1 %v1863_v7, %s1970_s26 }
 0x8dc   : > { %v1282_v57 = vpop.permute.xlu1 %1281 }
 0x8dd   : > { %v1284_v10 = vmul.f32 %v1282_v57, %v1279_v58 }
 0x8df   : > { %v1286_v11 = vadd.f32 %v1285_v9, %v1284_v10 }
 0x8e1   : > { %1288 = vrot.lane.b32.xlu0 %v1286_v11, %s1970_s26  ;;  %s1475_s26 = scalar_lea.sflag [#allocation6], %s2078_s21 }
 0x953   : > { %v1289_v13 = vpop.permute.xlu0 %1288 }
 0x954   : > { %1291 = vst.msk [vmem:[#allocation2] sm:$0xff] %vm357_vm2, %v1289_v13  ;;  %1292 = vst.msk [vmem:[%s2090_s29] sm:$0xff] %vm357_vm2, %v1289_v13  ;;  %1693 = vmatmul.mubr.msk.f32.vlgmr.msra.gmra.mrb[4].mxu0 %vm357_vm2, %v1289_v13 }
 0xa27   : > { %v1370_v56 = vpop.f32.mrb[4].mxu0 }
 0xa28   : > { %v1371_v18 = vadd.f32 %v1610_v63, %v1370_v56  ;;  %v1694_v19 = vpop.f32.mrb[5].mxu0 }
 0xa2a   : > { %1864 = vtanh.f32 %v1371_v18 }
 0xa34   : > { %v1865_v20 = vpop.eup %1864 }
 0xa35   : > { %1704 = vmatmul.mubr.msk.f32.vlgmr.msra.gmra.mrb[4].mxu1 %vm357_vm2, %v1865_v20 }
 0xb08   : > { %v1453_v21 = vpop.f32.mrb[4].mxu1 }
 0xb09   : > { %v1454_v22 = vadd.f32 %v1612_v4, %v1453_v21  ;;  %v1705_v23 = vpop.f32.mrb[5].mxu1 }
 0xb0b   : > { %1457 = vmax.xlane.f32.xlu1 %v1454_v22 }
 0xb98   : > { %v1458_v24 = vpop.xlane.xlu1 %1457 }
 0xb99   : > { %v1459_v25 = vsub.f32 %v1454_v22, %v1458_v24 }
 0xb9b   : > { %v1460_v26 = vmul.f32 1.442695, %v1459_v25 }
 0xb9d   : > { %1866 = vpow2.f32 %v1460_v26 }
 0xba7   : > { %v1867_v27 = vpop.eup %1866 }
 0xba8   : > { %1462 = vadd.xlane.f32.xlu0 %v1867_v27 }
 0xba9   : > { %1883 = shalt.err (!%p1880_p4)
}
 0xbaa   : > { %s1884_s29 = scalar_lea.hbm %s2460_s24, 128  ;;  %s1888_s14 = scalar_lea.hbm %s2540_s9, 384 }
 0xbab   : > { %p1885_p7 = scmp.ne.s32.totalorder %s2460_s24, %s1884_s29  ;;  %p1889_p10 = scmp.lt.u32.totalorder %s2460_s24, %s2540_s9 }
 0xbac   : > { %p1890_p11 = scmp.lt.u32.totalorder %s1888_s14, %s1884_s29  ;;  %p1892_p13 = scmp.lt.u32.totalorder %s1884_s29, %s2460_s24 }
 0xbad   : > { %p1886_p8 = pnand %p1885_p7, %p2067_p5 }
 0xbae   : > { %p1891_p12 = por %p1890_p11, %p1889_p10 }
 0xbaf   : > { %p1887_p9 = pneg %p1886_p8 }
 0xbb0   : > { %p1893_p0 = por %p1892_p13, %p1891_p12 }
 0xbb2   : > { %p1894_p1 = pnand %p1893_p0, %p1887_p9 }
 0xbb4   : > { %1897 = shalt.err (!%p1894_p1)
}
 0xbb5   : > { %1748 = dma.vmem_to_hbm [thread:$0]  (%p2067_p5), %s1502_s25, 128, %s2460_s24, %s1475_s26  }
 0xbb6   : > { %s1488_s22 = sshll.u32 %s2088_s28, 4  ;;  %s2487_s16 = scalar_lea.hbm %s2539_s8, %s1616_s17  ;;  %s2489_s22 = int_to_ptr.vmem [resolvable:$true] %s1488_s22 }
 0xbb7   : > { %s1470_s24 = scalar_lea.sflag [#allocation4], %s2078_s21  ;;  %s1898_s25 = scalar_lea.vmem %s2489_s22, 128 }
 0xbb8   : > { %p1899_p2 = scmp.ne.s32.totalorder %s2489_s22, %s1898_s25  ;;  %s1978_s26 = smov [#allocation3]  }
 0xbb9   : > { %s1902_s23 = sshll.u32 %s1978_s26, 4  ;;  %s1903_s23 = int_to_ptr.vmem [resolvable:$false] %s1902_s23 }
 0xbba   : > { %p1900_p3 = pnand %p1899_p2, %p2067_p5  ;;  %s1904_s13 = scalar_lea.vmem %s1903_s23, 256 }
 0xbbb   : > { %p1905_p7 = scmp.lt.s32.totalorder %s2489_s22, %s1903_s23  ;;  %p1906_p8 = scmp.lt.s32.totalorder %s1904_s13, %s1898_s25 }
 0xbbc   : > { %p1901_p4 = pneg %p1900_p3 }
 0xbbd   : > { %p1907_p9 = por %p1906_p8, %p1905_p7 }
 0xbbf   : > { %p1908_p10 = pnand %p1907_p9, %p1901_p4 }
 0xc35   : > { %v1463_v28 = vpop.xlane.xlu0 %1462 }
 0xc36   : > { %1868 = vlog2.f32 %v1463_v28 }
 0xc40   : > { %v1869_v29 = vpop.eup %1868 }
 0xc41   : > { %v1465_v30 = vmul.f32 0.6931472, %v1869_v29 }
 0xc43   : > { %v1466_v31 = vadd.f32 %v1465_v30, %v1458_v24 }
 0xc45   : > { %v1467_v32 = vsub.f32 %v1454_v22, %v1466_v31 }
 0xc47   : > { %1468 = vst [vmem:[%s2088_s28] sm:$0xff] %v1467_v32 }
 0xc48   : > { %1911 = shalt.err (!%p1908_p10)
}
 0xc49   : > { %s1912_s21 = scalar_lea.hbm %s2487_s16, 128  ;;  %s1916_s14 = scalar_lea.hbm %s2539_s8, 384 }
 0xc4a   : > { %p1913_p11 = scmp.ne.s32.totalorder %s2487_s16, %s1912_s21  ;;  %p1917_p0 = scmp.lt.u32.totalorder %s2487_s16, %s2539_s8 }
 0xc4b   : > { %p1918_p1 = scmp.lt.u32.totalorder %s1916_s14, %s1912_s21  ;;  %p1920_p3 = scmp.lt.u32.totalorder %s1912_s21, %s2487_s16 }
 0xc4c   : > { %p1914_p12 = pnand %p1913_p11, %p2067_p5 }
 0xc4d   : > { %p1919_p2 = por %p1918_p1, %p1917_p0 }
 0xc4e   : > { %p1915_p13 = pneg %p1914_p12 }
 0xc4f   : > { %p1921_p4 = por %p1920_p3, %p1919_p2 }
 0xc51   : > { %p1922_p7 = pnand %p1921_p4, %p1915_p13 }
 0xc53   : > { %1925 = shalt.err (!%p1922_p7)
}
 0xc54   : > { %1747 = dma.vmem_to_hbm [thread:$0]  (%p2067_p5), %s2489_s22, 128, %s2487_s16, %s1470_s24  }
 0xc55 PF: > { %p1758_p8 = scmp.ge.s32.totalorder %s1964_s12, 2  ;;  %s1513_s1 = sand.u32 1, %s1952_s30  }
 0xc56   : > { %s1514_s29 = scalar_lea.sflag [#allocation4], %s1513_s1 }
 0xc57   : > { %p1752_p9 = pnand %p1758_p8, %p2071_p6 }
 0xc59   : > { %1943 = dma.done.wait (!%p1752_p9), %s1514_s29, 128  }
 0xc5a   : > { %1945 = vsyncadd (!%p1752_p9), %s1514_s29, 4294967168  ;;  %s1523_s25 = scalar_lea.sflag [#allocation6], %s1513_s1 }
 0xc5b   : > { %1947 = dma.done.wait (!%p1752_p9), %s1523_s25, 128  }
 0xc5c   : > { %1949 = vsyncadd (!%p1752_p9), %s1523_s25, 4294967168  ;;  %p23_p5 = scmp.ge.s32.totalorder %s2054_s15, 5   ;;  %s2549_s30 = smov %s1956_s10 }
 0xc5d   : > { %s2550_s10 = smov %s1960_s11  ;;  %s2551_s11 = smov %s2065_s18 }
 0xc5e   : > { %s2552_s12 = smov %s2054_s15  ;;  %25 = sbr.rel (!%p23_p5) target bundleno = 8 (0x8), region = 108 }
 0xc65   :  { %1528 = vsyncpa [#allocation4], 1 }
 0xc66   :  { %1530 = vsyncpa [#allocation4 + $0x1], 1 }
 0xc67   :  { %1531 = vsyncpa [#allocation6], 1 }
 0xc68   :  { %1533 = vsyncpa [#allocation6 + $0x1], 1 }

</bundles_post_ra>
